<compile_context>
chip_gen: v7x
topology: tpu7x:2x2x1
jax: 0.10.0
libtpu: 0.0.40
codegen_flags: <defaults>
</compile_context>

<pallas_src>
import jax
import jax.numpy as jnp
from jax import lax
from jax.experimental import pallas as pl
from jax.experimental.pallas import tpu as pltpu


def _pwca_adj_kernel(z_ref, x_ref, w1_ref, b1_ref, w2_ref, b2_ref,
                     wa_ref, ba_ref, o_ref):
    """One batch element per grid step.

    z_ref : (1, C, K) bf16   template features, K = Hz*Wz = num_kernel
    x_ref : (1, C, P) bf16   search features,   P = Hx*Wx
    w1/w2 : (K, K)    bf16   CA 1x1-conv weights
    b1/b2 : (1, K)    f32    CA biases (lane-dense rows)
    wa    : (A, K)    bf16   adjust 1x1-conv weight, A = adj_channel
    ba    : (A, 1)    f32    adjust bias (column -> natural broadcast over P)
    o_ref : (1, A, P) f32
    """
    z = z_ref[0]                                        # (C, K) bf16
    x = x_ref[0]                                        # (C, P) bf16

    # mean over search positions (f32 accumulation): (C, 1)
    x_mean = jnp.mean(x.astype(jnp.float32), axis=-1, keepdims=True)

    # mean_p(corr) as a lane-dense row: avg[k] = sum_c z[c,k] * x_mean[c]
    avg = jnp.sum(z.astype(jnp.float32) * x_mean, axis=0, keepdims=True)  # (1, K)

    # Channel attention MLP in row-vector form (NT matmuls, f32 accumulate):
    #   a1 = relu(W1 @ avg + b1); a2 = W2 @ a1 + b2; att = sigmoid(a2)
    a1 = lax.dot_general(avg.astype(jnp.bfloat16), w1_ref[...],
                         (((1,), (1,)), ((), ())),
                         preferred_element_type=jnp.float32) + b1_ref[...]
    a1 = jnp.maximum(a1, 0.0)
    a2 = lax.dot_general(a1.astype(jnp.bfloat16), w2_ref[...],
                         (((1,), (1,)), ((), ())),
                         preferred_element_type=jnp.float32) + b2_ref[...]
    att = 1.0 / (1.0 + jnp.exp(-a2))                                      # (1, K) f32

    # Fold attention into the adjust weight, then contract K away against z:
    #   M[a, c] = sum_k Wa[a,k] * att[k] * z[c,k]     -> (A, C), tiny
    wa_scaled = (wa_ref[...].astype(jnp.float32) * att).astype(jnp.bfloat16)  # (A, K)
    m = lax.dot_general(wa_scaled, z, (((1,), (1,)), ((), ())),
                        preferred_element_type=jnp.float32)               # (A, C)

    # Single pass over the big (C, P) block: y = M @ x + ba
    y = lax.dot_general(m.astype(jnp.bfloat16), x, (((1,), (0,)), ((), ())),
                        preferred_element_type=jnp.float32)               # (A, P)
    o_ref[0] = (y + ba_ref[...]).astype(o_ref.dtype)


def pwca_adjust(z_nchw, x_nchw, w1, b1, w2, b2, w_adj, b_adj):
    """PWCA(matrix=True, CA=True, cat=False) followed by the 1x1 adjust conv."""
    B, C, Hz, Wz = z_nchw.shape
    Bx, Cx, Hx, Wx = x_nchw.shape
    assert B == Bx and C == Cx
    K = Hz * Wz                       # num_kernel
    P = Hx * Wx
    A = w_adj.shape[0]                # adj_channel

    # Free reshapes only; bf16 feed for the MXU, f32 biases.
    z = z_nchw.reshape(B, C, K).astype(jnp.bfloat16)
    x = x_nchw.reshape(B, C, P).astype(jnp.bfloat16)
    w1m = w1.reshape(K, K).astype(jnp.bfloat16)
    w2m = w2.reshape(K, K).astype(jnp.bfloat16)
    wam = w_adj.reshape(A, K).astype(jnp.bfloat16)
    b1m = b1.reshape(1, K).astype(jnp.float32)
    b2m = b2.reshape(1, K).astype(jnp.float32)
    bam = b_adj.reshape(A, 1).astype(jnp.float32)

    out = pl.pallas_call(
        _pwca_adj_kernel,
        out_shape=jax.ShapeDtypeStruct((B, A, P), jnp.float32),
        grid_spec=pltpu.PrefetchScalarGridSpec(
            num_scalar_prefetch=0,
            grid=(B,),
            in_specs=[
                pl.BlockSpec((1, C, K), lambda b: (b, 0, 0)),   # template
                pl.BlockSpec((1, C, P), lambda b: (b, 0, 0)),   # search
                pl.BlockSpec((K, K), lambda b: (0, 0)),         # CA fc1 weight
                pl.BlockSpec((1, K), lambda b: (0, 0)),         # CA fc1 bias (row)
                pl.BlockSpec((K, K), lambda b: (0, 0)),         # CA fc2 weight
                pl.BlockSpec((1, K), lambda b: (0, 0)),         # CA fc2 bias (row)
                pl.BlockSpec((A, K), lambda b: (0, 0)),         # adjust weight
                pl.BlockSpec((A, 1), lambda b: (0, 0)),         # adjust bias
            ],
            out_specs=pl.BlockSpec((1, A, P), lambda b: (b, 0, 0)),
        ),
        compiler_params=pltpu.CompilerParams(
            dimension_semantics=("parallel",),
            vmem_limit_bytes=32 << 20,
        ),
    )(z, x, w1m, b1m, w2m, b2m, wam, bam)

    return out.reshape(B, A, Hx, Wx)


def point_neck_forward(kernel_feat, search_feat, params, stride_idx):
    """Pallas equivalent of Point_Neck_Mobile_simple_DP.forward
    (defaults: cat=False, matrix=True, CA=True, adjust=True)."""
    p = params[stride_idx]
    corr_feat = pwca_adjust(kernel_feat, search_feat,
                            p["ca_fc1_w"], p["ca_fc1_b"],
                            p["ca_fc2_w"], p["ca_fc2_b"],
                            p["adj_w"], p["adj_b"])
    return {"cls": corr_feat, "reg": corr_feat}


def _ref_forward(z, x, p):
    """Pure-JAX f32 reference of the PyTorch forward."""
    z = z.astype(jnp.float32)
    x = x.astype(jnp.float32)
    B, C, Hz, Wz = z.shape
    _, _, Hx, Wx = x.shape
    K = Hz * Wz
    P = Hx * Wx
    A = p["adj_w"].shape[0]

    z_mat = jnp.transpose(z.reshape(B, C, K), (0, 2, 1))               # (B, K, C)
    x_mat = x.reshape(B, C, P)                                         # (B, C, P)
    corr = jnp.einsum("bkc,bcp->bkp", z_mat, x_mat,
                      precision=jax.lax.Precision.HIGHEST)             # (B, K, P)

    avg = jnp.mean(corr, axis=-1)                                      # (B, K)
    w1 = p["ca_fc1_w"].reshape(K, K)
    w2 = p["ca_fc2_w"].reshape(K, K)
    a1 = jnp.maximum(avg @ w1.T + p["ca_fc1_b"], 0.0)
    a2 = a1 @ w2.T + p["ca_fc2_b"]
    att = 1.0 / (1.0 + jnp.exp(-a2))                                   # (B, K)
    scaled = corr * att[:, :, None]

    wa = p["adj_w"].reshape(A, K)
    y = jnp.einsum("ak,bkp->bap", wa, scaled,
                   precision=jax.lax.Precision.HIGHEST) + p["adj_b"].reshape(1, A, 1)
    return y.reshape(B, A, Hx, Wx)


if __name__ == "__main__":
    key = jax.random.PRNGKey(0)

    B, C = 2, 32                      # batch, backbone feature channels
    adj_channel = 128
    num_kernel_list = (256, 64)       # stride 8 -> 16x16 template, stride 16 -> 8x8
    template_hw = (16, 8)
    search_hw = (32, 16)

    # Deterministic synthetic parameters for both stride branches.
    params = []
    for K in num_kernel_list:
        key, k1, k2, k3, k4, k5, k6 = jax.random.split(key, 7)
        params.append({
            "ca_fc1_w": 0.1 * jax.random.normal(k1, (K, K), jnp.float32),
            "ca_fc1_b": 0.5 * jax.random.normal(k2, (K,), jnp.float32),
            "ca_fc2_w": 0.1 * jax.random.normal(k3, (K, K), jnp.float32),
            "ca_fc2_b": 0.5 * jax.random.normal(k4, (K,), jnp.float32),
            "adj_w": 0.1 * jax.random.normal(k5, (adj_channel, K), jnp.float32),
            "adj_b": jax.random.normal(k6, (adj_channel,), jnp.float32),
        })

    for stride_idx in (0, 1):
        thw = template_hw[stride_idx]
        shw = search_hw[stride_idx]
        key, kz, kx = jax.random.split(key, 3)
        kernel_feat = jax.random.normal(kz, (B, C, thw, thw), jnp.float32)
        search_feat = jax.random.normal(kx, (B, C, shw, shw), jnp.float32)

        oup = point_neck_forward(kernel_feat, search_feat, params, stride_idx)
        out_cls = jax.block_until_ready(oup["cls"])
        out_reg = jax.block_until_ready(oup["reg"])

        ref = _ref_forward(kernel_feat, search_feat, params[stride_idx])

        assert out_cls.shape == (B, adj_channel, shw, shw)
        assert out_reg.shape == (B, adj_channel, shw, shw)
        assert bool(jnp.all(out_cls == out_reg))
        err = float(jnp.max(jnp.abs(out_cls - ref)))
        scale = 1.0 + float(jnp.max(jnp.abs(ref)))
        assert err <= 2e-2 * scale, (stride_idx, err, scale)

    print("KERNEL_OK")
</pallas_src>

<mosaic_0001>
module attributes {stable_mosaic.version = 11 : i64} {
  func.func @_pwca_adj_kernel(%arg0: i32, %arg1: memref<1x32x256xbf16, #tpu.memory_space<vmem>>, %arg2: memref<1x32x1024xbf16, #tpu.memory_space<vmem>>, %arg3: memref<256x256xbf16, #tpu.memory_space<vmem>>, %arg4: memref<1x256xf32, #tpu.memory_space<vmem>>, %arg5: memref<256x256xbf16, #tpu.memory_space<vmem>>, %arg6: memref<1x256xf32, #tpu.memory_space<vmem>>, %arg7: memref<128x256xbf16, #tpu.memory_space<vmem>>, %arg8: memref<128x1xf32, #tpu.memory_space<vmem>>, %arg9: memref<1x128x1024xf32, #tpu.memory_space<vmem>>) attributes {dimension_semantics = [#tpu.dimension_semantics<parallel>], iteration_bounds = array<i64: 2>, scalar_prefetch = 0 : i64, scratch_operands = 0 : i64, tpu.core_type = #tpu.core_type<tc>, window_params = [{transform_indices = @transform_0, window_bounds = array<i64: 1, 32, 256>}, {transform_indices = @transform_1, window_bounds = array<i64: 1, 32, 1024>}, {pipeline_mode = #tpu.pipeline_mode<synchronous>, transform_indices = @transform_2, window_bounds = array<i64: 256, 256>}, {pipeline_mode = #tpu.pipeline_mode<synchronous>, transform_indices = @transform_3, window_bounds = array<i64: 1, 256>}, {pipeline_mode = #tpu.pipeline_mode<synchronous>, transform_indices = @transform_4, window_bounds = array<i64: 256, 256>}, {pipeline_mode = #tpu.pipeline_mode<synchronous>, transform_indices = @transform_5, window_bounds = array<i64: 1, 256>}, {pipeline_mode = #tpu.pipeline_mode<synchronous>, transform_indices = @transform_6, window_bounds = array<i64: 128, 256>}, {pipeline_mode = #tpu.pipeline_mode<synchronous>, transform_indices = @transform_7, window_bounds = array<i64: 128, 1>}, {transform_indices = @transform_8, window_bounds = array<i64: 1, 128, 1024>}]} {
    %c0 = arith.constant 0 : index
    %c0_0 = arith.constant 0 : index
    %c0_1 = arith.constant 0 : index
    %0 = vector.load %arg1[%c0, %c0_0, %c0_1] : memref<1x32x256xbf16, #tpu.memory_space<vmem>>, vector<1x32x256xbf16>
    %1 = vector.shape_cast %0 : vector<1x32x256xbf16> to vector<32x256xbf16>
    %c0_2 = arith.constant 0 : index
    %c0_3 = arith.constant 0 : index
    %c0_4 = arith.constant 0 : index
    %2 = vector.load %arg2[%c0_2, %c0_3, %c0_4] : memref<1x32x1024xbf16, #tpu.memory_space<vmem>>, vector<1x32x1024xbf16>
    %3 = vector.shape_cast %2 : vector<1x32x1024xbf16> to vector<32x1024xbf16>
    %4 = arith.extf %3 : vector<32x1024xbf16> to vector<32x1024xf32>
    %cst = arith.constant dense<0.000000e+00> : vector<32xf32>
    %5 = vector.multi_reduction <add>, %4, %cst [1] : vector<32x1024xf32> to vector<32xf32>
    %6 = vector.shape_cast %5 : vector<32xf32> to vector<32x1xf32>
    %cst_5 = arith.constant 1.024000e+03 : f32
    %7 = vector.broadcast %cst_5 : f32 to vector<32x1xf32>
    %8 = arith.divf %6, %7 : vector<32x1xf32>
    %9 = arith.extf %1 : vector<32x256xbf16> to vector<32x256xf32>
    %10 = vector.broadcast %8 : vector<32x1xf32> to vector<32x256xf32>
    %11 = arith.mulf %9, %10 : vector<32x256xf32>
    %cst_6 = arith.constant dense<0.000000e+00> : vector<256xf32>
    %12 = vector.multi_reduction <add>, %11, %cst_6 [0] : vector<32x256xf32> to vector<256xf32>
    %13 = vector.shape_cast %12 : vector<256xf32> to vector<1x256xf32>
    %14 = arith.truncf %13 : vector<1x256xf32> to vector<1x256xbf16>
    %c0_7 = arith.constant 0 : index
    %c0_8 = arith.constant 0 : index
    %15 = vector.load %arg3[%c0_7, %c0_8] : memref<256x256xbf16, #tpu.memory_space<vmem>>, vector<256x256xbf16>
    %cst_9 = arith.constant dense<0.000000e+00> : vector<1x256xf32>
    %16 = tpu.matmul %14, %15, %cst_9 {dimension_numbers = #tpu.dot_dimension_numbers<[1], [1], [0], [0], [0, 0, 1, 0], [], []>} : vector<1x256xbf16>, vector<256x256xbf16>, vector<1x256xf32> -> vector<1x256xf32>
    %c0_10 = arith.constant 0 : index
    %c0_11 = arith.constant 0 : index
    %17 = vector.load %arg4[%c0_10, %c0_11] : memref<1x256xf32, #tpu.memory_space<vmem>>, vector<1x256xf32>
    %18 = arith.addf %16, %17 : vector<1x256xf32>
    %cst_12 = arith.constant 0.000000e+00 : f32
    %19 = vector.broadcast %cst_12 : f32 to vector<1x256xf32>
    %20 = arith.maximumf %18, %19 : vector<1x256xf32>
    %21 = arith.truncf %20 : vector<1x256xf32> to vector<1x256xbf16>
    %c0_13 = arith.constant 0 : index
    %c0_14 = arith.constant 0 : index
    %22 = vector.load %arg5[%c0_13, %c0_14] : memref<256x256xbf16, #tpu.memory_space<vmem>>, vector<256x256xbf16>
    %cst_15 = arith.constant dense<0.000000e+00> : vector<1x256xf32>
    %23 = tpu.matmul %21, %22, %cst_15 {dimension_numbers = #tpu.dot_dimension_numbers<[1], [1], [0], [0], [0, 0, 1, 0], [], []>} : vector<1x256xbf16>, vector<256x256xbf16>, vector<1x256xf32> -> vector<1x256xf32>
    %c0_16 = arith.constant 0 : index
    %c0_17 = arith.constant 0 : index
    %24 = vector.load %arg6[%c0_16, %c0_17] : memref<1x256xf32, #tpu.memory_space<vmem>>, vector<1x256xf32>
    %25 = arith.addf %23, %24 : vector<1x256xf32>
    %cst_18 = arith.constant 0.000000e+00 : f32
    %26 = vector.broadcast %cst_18 : f32 to vector<1x256xf32>
    %27 = arith.subf %26, %25 : vector<1x256xf32>
    %28 = math.exp %27 : vector<1x256xf32>
    %cst_19 = arith.constant 1.000000e+00 : f32
    %29 = vector.broadcast %cst_19 : f32 to vector<1x256xf32>
    %30 = arith.addf %29, %28 : vector<1x256xf32>
    %cst_20 = arith.constant 1.000000e+00 : f32
    %31 = vector.broadcast %cst_20 : f32 to vector<1x256xf32>
    %32 = arith.divf %31, %30 : vector<1x256xf32>
    %c0_21 = arith.constant 0 : index
    %c0_22 = arith.constant 0 : index
    %33 = vector.load %arg7[%c0_21, %c0_22] : memref<128x256xbf16, #tpu.memory_space<vmem>>, vector<128x256xbf16>
    %34 = arith.extf %33 : vector<128x256xbf16> to vector<128x256xf32>
    %35 = vector.broadcast %32 : vector<1x256xf32> to vector<128x256xf32>
    %36 = arith.mulf %34, %35 : vector<128x256xf32>
    %37 = arith.truncf %36 : vector<128x256xf32> to vector<128x256xbf16>
    %cst_23 = arith.constant dense<0.000000e+00> : vector<128x32xf32>
    %38 = tpu.matmul %37, %1, %cst_23 {dimension_numbers = #tpu.dot_dimension_numbers<[1], [1], [0], [0], [0, 0, 1, 0], [], []>} : vector<128x256xbf16>, vector<32x256xbf16>, vector<128x32xf32> -> vector<128x32xf32>
    %39 = arith.truncf %38 : vector<128x32xf32> to vector<128x32xbf16>
    %cst_24 = arith.constant dense<0.000000e+00> : vector<128x1024xf32>
    %40 = tpu.matmul %39, %3, %cst_24 {dimension_numbers = #tpu.dot_dimension_numbers<[1], [0], [0], [1], [0, 0, 1, 1], [], []>} : vector<128x32xbf16>, vector<32x1024xbf16>, vector<128x1024xf32> -> vector<128x1024xf32>
    %c0_25 = arith.constant 0 : index
    %c0_26 = arith.constant 0 : index
    %41 = vector.load %arg8[%c0_25, %c0_26] : memref<128x1xf32, #tpu.memory_space<vmem>>, vector<128x1xf32>
    %42 = vector.broadcast %41 : vector<128x1xf32> to vector<128x1024xf32>
    %43 = arith.addf %40, %42 : vector<128x1024xf32>
    %c0_27 = arith.constant 0 : index
    %c0_28 = arith.constant 0 : index
    %c0_29 = arith.constant 0 : index
    %44 = vector.load %arg9[%c0_27, %c0_28, %c0_29] : memref<1x128x1024xf32, #tpu.memory_space<vmem>>, vector<1x128x1024xf32>
    %45 = vector.shape_cast %44 : vector<1x128x1024xf32> to vector<128x1024xf32>
    %46 = vector.shape_cast %43 : vector<128x1024xf32> to vector<1x128x1024xf32>
    tpu.vector_store %arg9[%c0_27, %c0_28, %c0_29], %46 {strides = array<i32>} : memref<1x128x1024xf32, #tpu.memory_space<vmem>>, vector<1x128x1024xf32>,
    return
  }
  func.func @transform_0(%arg0: i32) -> (i32, i32, i32) {
    %c0_i32 = arith.constant 0 : i32
    %c0_i32_0 = arith.constant 0 : i32
    %c0_i32_1 = arith.constant 0 : i32
    return %arg0, %c0_i32, %c0_i32_0 : i32, i32, i32
  }
  func.func @transform_1(%arg0: i32) -> (i32, i32, i32) {
    %c0_i32 = arith.constant 0 : i32
    %c0_i32_0 = arith.constant 0 : i32
    %c0_i32_1 = arith.constant 0 : i32
    return %arg0, %c0_i32, %c0_i32_0 : i32, i32, i32
  }
  func.func @transform_2(%arg0: i32) -> (i32, i32) {
    %c0_i32 = arith.constant 0 : i32
    %c0_i32_0 = arith.constant 0 : i32
    %c0_i32_1 = arith.constant 0 : i32
    return %c0_i32, %c0_i32_0 : i32, i32
  }
  func.func @transform_3(%arg0: i32) -> (i32, i32) {
    %c0_i32 = arith.constant 0 : i32
    %c0_i32_0 = arith.constant 0 : i32
    %c0_i32_1 = arith.constant 0 : i32
    return %c0_i32, %c0_i32_0 : i32, i32
  }
  func.func @transform_4(%arg0: i32) -> (i32, i32) {
    %c0_i32 = arith.constant 0 : i32
    %c0_i32_0 = arith.constant 0 : i32
    %c0_i32_1 = arith.constant 0 : i32
    return %c0_i32, %c0_i32_0 : i32, i32
  }
  func.func @transform_5(%arg0: i32) -> (i32, i32) {
    %c0_i32 = arith.constant 0 : i32
    %c0_i32_0 = arith.constant 0 : i32
    %c0_i32_1 = arith.constant 0 : i32
    return %c0_i32, %c0_i32_0 : i32, i32
  }
  func.func @transform_6(%arg0: i32) -> (i32, i32) {
    %c0_i32 = arith.constant 0 : i32
    %c0_i32_0 = arith.constant 0 : i32
    %c0_i32_1 = arith.constant 0 : i32
    return %c0_i32, %c0_i32_0 : i32, i32
  }
  func.func @transform_7(%arg0: i32) -> (i32, i32) {
    %c0_i32 = arith.constant 0 : i32
    %c0_i32_0 = arith.constant 0 : i32
    %c0_i32_1 = arith.constant 0 : i32
    return %c0_i32, %c0_i32_0 : i32, i32
  }
  func.func @transform_8(%arg0: i32) -> (i32, i32, i32) {
    %c0_i32 = arith.constant 0 : i32
    %c0_i32_0 = arith.constant 0 : i32
    %c0_i32_1 = arith.constant 0 : i32
    return %arg0, %c0_i32, %c0_i32_0 : i32, i32, i32
  }
}

</mosaic_0001>

<bundles_post_ra>
// kernel: tpu_custom_call.1
= control target key start
LH: loop header
LB: loop body
LE: loop exit
PB: predicated region body
PF: predicated region fallthrough
CT: control target
= control target key end

     0   :  { %s3708_s0 = inlined_call_operand.hbm [shape: bf16[2,32,256], index: 0, kind: input, shape index: {}]   ;;  %s3709_s1 = inlined_call_operand.hbm [shape: bf16[2,32,1024], index: 1, kind: input, shape index: {}]   ;;  %s3710_s2 = inlined_call_operand.hbm [shape: bf16[256,256], index: 2, kind: input, shape index: {}]   ;;  %s3711_s3 = inlined_call_operand.vmem [shape: f32[1,256], index: 3, kind: input, shape index: {}]   ;;  %s3712_s4 = inlined_call_operand.hbm [shape: bf16[256,256], index: 4, kind: input, shape index: {}]   ;;  %s3713_s5 = inlined_call_operand.vmem [shape: f32[1,256], index: 5, kind: input, shape index: {}]   ;;  %s3714_s6 = inlined_call_operand.vmem [shape: bf16[128,256], index: 6, kind: input, shape index: {}]   ;;  %s3715_s7 = inlined_call_operand.vmem [shape: f32[128,1], index: 7, kind: input, shape index: {}]   ;;  %s3716_s8 = inlined_call_operand.hbm [shape: f32[2,128,1024], index: 8, kind: output, shape index: {}]  }
   0x1   :  { %3725 = sst [smem:[#allocation19_spill]] %s3708_s0 }
   0x2   :  { %3726 = sst [smem:[#allocation20_spill]] %s3710_s2 }
   0x3   :  { %3727 = sst [smem:[#allocation21_spill]] %s3712_s4 }
   0x4   :  { %13 = vsyncpa [#allocation3], 0 }
   0x5   :  { %15 = vsyncpa [#allocation3 + $0x1], 0 }
   0x6   :  { %16 = vsyncpa [#allocation6], 0 }
   0x7   :  { %18 = vsyncpa [#allocation6 + $0x1], 0 }
   0x8   :  { %19 = vsyncpa [#allocation9], 0 }
   0x9   :  { %20 = vsyncpa [#allocation4], 0 }
   0xa   :  { %22 = vsyncpa [#allocation4 + $0x1], 0  ;;  %s2765_s27 = smov 0   ;;  %s2767_s28 = smov 0  }
   0xb   :  { %s2769_s29 = smov 0   ;;  %s2771_s30 = smov 0  }
   0xc LB: > { %3728 = sst [smem:[#allocation16_spill]] %s2702_s29  ;;  %s2786_s9 = sadd.s32 4294967295, %s2706_s30   ;;  %s2706_s30 = sphi %s2771_s30, %s3752_s30   ;;  %s2702_s29 = sphi %s2769_s29, %s3754_s29   ;;  %s2698_s28 = sphi %s2767_s28, %s3756_s28   ;;  %s2694_s27 = sphi %s2765_s27, %s3755_s27  }
   0xd   : > { %s2168_s10 = sadd.s32 4294967294, %s2706_s30   ;;  %p48_p0 = scmp.ne.s32.totalorder %s2698_s28, %s2694_s27 }
   0xe   : > { %p3717_p1 = scmp.eq.s32.totalorder %s2786_s9, 0  ;;  %p230_p3 = scmp.eq.s32.totalorder %s2168_s10, 1 }
   0xf   : > { %p2169_p5 = scmp.ge.s32.totalorder %s2706_s30, 1  ;;  %p237_p7 = scmp.lt.s32.totalorder %s2706_s30, 3 }
  0x10   : > { %p2795_p4 = por %p3717_p1, %p48_p0  ;;  %p2800_p6 = por %p230_p3, %p48_p0 }
  0x11   : > { %p2805_p8 = pnand %p2169_p5, %p237_p7  ;;  %s2708_s14 = smov [#allocation7]  }
  0x12   : > { %s3729_s11 = scalar_select %p2795_p4, 1, 0 }
  0x13   : > { %s3730_s12 = scalar_select %p2800_p6, 1, 0 }
  0x14   : > { %s249_s15 = sshll.u32 %s2708_s14, 4  ;;  %p2327_p9 = pneg %p2805_p8  ;;  %s2809_s15 = int_to_ptr.vmem [resolvable:$true] %s249_s15 }
  0x15   : > { %s2709_s17 = smov [#allocation8]   ;;  %s3733_s2 = sld [smem:[#allocation20_spill]] }
  0x16   : > { %p2816_p11 = pnand %p2327_p9, %p3717_p1  ;;  %s265_s18 = sshll.u32 %s2709_s17, 4  ;;  %s2820_s18 = int_to_ptr.vmem [resolvable:$true] %s265_s18 }
  0x18   : > { %p2514_p13 = pneg %p2816_p11 }
  0x1b   : > { %s2512_s21 = scalar_lea.hbm %s3733_s2, 4096 }
  0x1c   : > { %p2513_p12 = scmp.ne.s32.totalorder %s3733_s2, %s2512_s21  ;;  %p2519_p5 = scmp.lt.u32.totalorder %s2512_s21, %s3733_s2 }
  0x1e   : > { %p2515_p0 = pnand %p2514_p13, %p2513_p12 }
  0x20   : > { %p2516_p3 = pneg %p2515_p0 }
  0x22   : > { %p2521_p7 = pnand %p2519_p5, %p2516_p3 }
  0x24   : > { %2524 = shalt.err (!%p2521_p7)
}
  0x25   : > { %s2525_s26 = scalar_lea.vmem %s2809_s15, 4096  ;;  %p2533_p2 = scmp.lt.s32.totalorder %s2809_s15, %s2809_s15 }
  0x26   : > { %p2526_p9 = scmp.ne.s32.totalorder %s2809_s15, %s2525_s26  ;;  %p2534_p12 = scmp.lt.s32.totalorder %s2525_s26, %s2525_s26 }
  0x28   : > { %p2528_p10 = pnand %p2526_p9, %p2514_p13  ;;  %p2535_p0 = por %p2534_p12, %p2533_p2 }
  0x2a   : > { %p2529_p1 = pneg %p2528_p10 }
  0x2c   : > { %p2536_p6 = pnand %p2535_p0, %p2529_p1 }
  0x2e   : > { %2539 = shalt.err (!%p2536_p6)
}
  0x2f   : > { %s3718_s10 = smov 128   ;;  %s3719_s14 = smov 8  }
  0x30   : > { %2330 = dma.hbm_to_vmem [thread:$0]  (!%p2816_p11), %s3733_s2, 4096, %s2809_s15, [#allocation6], %s3718_s10, %s3718_s10, %s3719_s14  }
  0x31   : > { %s3734_s4 = sld [smem:[#allocation21_spill]] }
  0x37   : > { %s2540_s22 = scalar_lea.hbm %s3734_s4, 4096 }
  0x38   : > { %p2541_p1 = scmp.ne.s32.totalorder %s3734_s4, %s2540_s22  ;;  %p2547_p10 = scmp.lt.u32.totalorder %s2540_s22, %s3734_s4 }
  0x3a   : > { %p2543_p2 = pnand %p2541_p1, %p2514_p13 }
  0x3c   : > { %p2544_p6 = pneg %p2543_p2 }
  0x3e   : > { %p2549_p3 = pnand %p2547_p10, %p2544_p6 }
  0x40   : > { %2552 = shalt.err (!%p2549_p3)
}
  0x41   : > { %s2553_s15 = scalar_lea.vmem %s2820_s18, 4096  ;;  %p2561_p12 = scmp.lt.s32.totalorder %s2820_s18, %s2820_s18 }
  0x42   : > { %p2554_p5 = scmp.ne.s32.totalorder %s2820_s18, %s2553_s15  ;;  %p2562_p0 = scmp.lt.s32.totalorder %s2553_s15, %s2553_s15 }
  0x44   : > { %p2556_p7 = pnand %p2554_p5, %p2514_p13  ;;  %p2563_p1 = por %p2562_p0, %p2561_p12 }
  0x46   : > { %p2557_p9 = pneg %p2556_p7 }
  0x48   : > { %p2564_p2 = pnand %p2563_p1, %p2557_p9 }
  0x4a   : > { %2567 = shalt.err (!%p2564_p2)
}
  0x4b   : > { %2333 = dma.hbm_to_vmem [thread:$0]  (!%p2816_p11), %s3734_s4, 4096, %s2820_s18, [#allocation9], %s3718_s10, %s3718_s10, %s3719_s14  }
  0x4c   : > { %s2881_s16 = sadd.s32 1, %s2706_s30   ;;  %s35_s20 = sadd.s32 1, %s2702_s29 }
  0x4d   : > { %3735 = sst [smem:[#allocation17_spill]] %s2881_s16  ;;  %s32_s21 = ssub.s32 %s2706_s30, %s2881_s16 }
  0x4e   : > { %p42_p13 = scmp.ne.s32.totalorder %s2702_s29, %s2698_s28  ;;  %p33_p6 = scmp.eq.s32.totalorder %s32_s21, 0 }
  0x4f   : > { %p43_p10 = scmp.eq.s32.totalorder %s2706_s30, 0  ;;  %p3736_p3 = scmp.eq.s32.totalorder %s2786_s9, 1 }
  0x50   : > { %p2347_p7 = scmp.lt.s32.totalorder %s2706_s30, 2  ;;  %s2900_s24 = sand.u32 1, %s2702_s29  }
  0x51   : > { %p2891_p5 = por %p3736_p3, %p42_p13  ;;  %p44_p9 = por %p43_p10, %p42_p13 }
  0x52   : > { %s2897_s23 = scalar_select %p33_p6, %s2702_s29, %s35_s20  }
  0x53   : > { %s3737_s22 = scalar_select %p2891_p5, 1, 0 }
  0x54   : > { %3738 = sst [smem:[#allocation18_spill]] %s2897_s23  ;;  %s2173_s18 = sshll.u32 %s2900_s24, 5 }
  0x55   : > { %s2306_s25 = sshll.u32 %s2706_s30, 9  ;;  %s3739_s0 = sld [smem:[#allocation19_spill]] }
  0x56   : > { %s292_s19 = scalar_lea.vmem [#allocation2], %s2173_s18  ;;  %p2911_p11 = pnand %p2347_p7, %p44_p9 }
  0x57   : > { %s299_s20 = sshll.u32 %s292_s19, 4  ;;  %s2176_s14 = sshll.u32 %s2900_s24, 7  ;;  %s2909_s20 = int_to_ptr.vmem [resolvable:$true] %s299_s20 }
  0x58   : > { %s289_s2 = scalar_lea.sflag [#allocation3], %s2900_s24  ;;  %p2570_p0 = pneg %p2911_p11 }
  0x5b   : > { %s2907_s17 = scalar_lea.hbm %s3739_s0, %s2306_s25  ;;  %s2573_s15 = scalar_lea.hbm %s3739_s0, 1024 }
  0x5c   : > { %s2568_s26 = scalar_lea.hbm %s2907_s17, 512  ;;  %p2574_p13 = scmp.lt.u32.totalorder %s2907_s17, %s3739_s0 }
  0x5d   : > { %p2569_p12 = scmp.ne.s32.totalorder %s2907_s17, %s2568_s26  ;;  %p2575_p6 = scmp.lt.u32.totalorder %s2573_s15, %s2568_s26 }
  0x5e   : > { %p2577_p3 = scmp.lt.u32.totalorder %s2568_s26, %s2907_s17 }
  0x5f   : > { %p2571_p1 = pnand %p2570_p0, %p2569_p12  ;;  %p2576_p10 = por %p2575_p6, %p2574_p13 }
  0x61   : > { %p2572_p2 = pneg %p2571_p1  ;;  %p2578_p7 = por %p2577_p3, %p2576_p10 }
  0x63   : > { %p2579_p9 = pnand %p2578_p7, %p2572_p2 }
  0x65   : > { %2582 = shalt.err (!%p2579_p9)
}
  0x66   : > { %s2583_s10 = scalar_lea.vmem %s2909_s20, 512  ;;  %s2712_s18 = smov [#allocation2]  }
  0x67   : > { %p2584_p12 = scmp.ne.s32.totalorder %s2909_s20, %s2583_s10  ;;  %s2588_s25 = sshll.u32 %s2712_s18, 4  ;;  %s2589_s25 = int_to_ptr.vmem [resolvable:$false] %s2588_s25 }
  0x68   : > { %s2590_s4 = scalar_lea.vmem %s2589_s25, 1024  ;;  %p2591_p4 = scmp.lt.s32.totalorder %s2909_s20, %s2589_s25 }
  0x69   : > { %p2586_p1 = pnand %p2584_p12, %p2570_p0  ;;  %p2592_p13 = scmp.lt.s32.totalorder %s2590_s4, %s2583_s10 }
  0x6b   : > { %p2587_p5 = pneg %p2586_p1  ;;  %p2593_p6 = por %p2592_p13, %p2591_p4 }
  0x6d   : > { %p2594_p10 = pnand %p2593_p6, %p2587_p5 }
  0x6f   : > { %2597 = shalt.err (!%p2594_p10)
}
  0x70   : > { %s3741_s26 = smov 8   ;;  %s3742_s15 = smov 128  }
  0x71   : > { %2337 = dma.hbm_to_vmem [thread:$0]  (!%p2911_p11), %s2907_s17, 512, %s2909_s20, %s289_s2, %s3742_s15, %s3742_s15, %s3741_s26  }
  0x72   : > { %s2307_s19 = sshll.u32 %s2706_s30, 11  ;;  %s313_s4 = scalar_lea.vmem [#allocation5], %s2176_s14 }
  0x73   : > { %s2952_s25 = scalar_lea.hbm %s3709_s1, %s2307_s19  ;;  %s320_s0 = sshll.u32 %s313_s4, 4  ;;  %s2956_s0 = int_to_ptr.vmem [resolvable:$true] %s320_s0 }
  0x74   : > { %s3743_s23 = sand.u32 1, %s2706_s30   ;;  %s2598_s16 = scalar_lea.hbm %s2952_s25, 2048 }
  0x75   : > { %s2960_s29 = scalar_lea.sflag [#allocation6], %s3743_s23  ;;  %p2599_p4 = scmp.ne.s32.totalorder %s2952_s25, %s2598_s16 }
  0x76   : > { %s2603_s24 = scalar_lea.hbm %s3709_s1, 4096  ;;  %p2604_p3 = scmp.lt.u32.totalorder %s2952_s25, %s3709_s1 }
  0x77   : > { %p2601_p5 = pnand %p2599_p4, %p2570_p0  ;;  %p2605_p7 = scmp.lt.u32.totalorder %s2603_s24, %s2598_s16 }
  0x78   : > { %p2607_p12 = scmp.lt.u32.totalorder %s2598_s16, %s2952_s25 }
  0x79   : > { %p2602_p2 = pneg %p2601_p5  ;;  %p2606_p9 = por %p2605_p7, %p2604_p3 }
  0x7b   : > { %p2608_p1 = por %p2607_p12, %p2606_p9 }
  0x7d   : > { %p2609_p13 = pnand %p2608_p1, %p2602_p2 }
  0x7f   : > { %2612 = shalt.err (!%p2609_p13)
}
  0x80   : > { %s2613_s14 = scalar_lea.vmem %s2956_s0, 2048  ;;  %s2713_s23 = smov [#allocation5]  }
  0x81   : > { %p2614_p6 = scmp.ne.s32.totalorder %s2956_s0, %s2613_s14  ;;  %s2618_s15 = sshll.u32 %s2713_s23, 4  ;;  %s2619_s15 = int_to_ptr.vmem [resolvable:$false] %s2618_s15 }
  0x82   : > { %s2620_s19 = scalar_lea.vmem %s2619_s15, 4096  ;;  %p2621_p5 = scmp.lt.s32.totalorder %s2956_s0, %s2619_s15 }
  0x83   : > { %p2616_p10 = pnand %p2614_p6, %p2570_p0  ;;  %p2622_p3 = scmp.lt.s32.totalorder %s2620_s19, %s2613_s14 }
  0x85   : > { %p2617_p4 = pneg %p2616_p10  ;;  %p2623_p7 = por %p2622_p3, %p2621_p5 }
  0x87   : > { %p2624_p9 = pnand %p2623_p7, %p2617_p4 }
  0x89   : > { %2627 = shalt.err (!%p2624_p9)
}
  0x8a   : > { %s2714_s16 = smov 512   ;;  %s2715_s18 = smov 32  }
  0x8b   : > { %2340 = dma.hbm_to_vmem [thread:$0]  (!%p2911_p11), %s2952_s25, 2048, %s2956_s0, %s2960_s29, %s2714_s16, %s2714_s16, %s2715_s18  }
  0x8c   : > { %332 = sbr.rel (%p2805_p8) target bundleno = 1447 (0x5a7), region = 52  ;;  %s2989_s10 = sand.u32 (!%p2805_p8), 1, %s2698_s28  }
  0x8d   : > { %s2180_s4 = sshll.u32 (!%p2805_p8), %s2989_s10, 5  ;;  %s335_s2 = scalar_lea.sflag (!%p2805_p8), [#allocation3], %s2989_s10 }
  0x8e   : > { %s2993_s17 = scalar_lea.vmem (!%p2805_p8), [#allocation2], %s2180_s4  ;;  %p3744_p0 = scmp.ne.s32.totalorder (!%p2805_p8), %s3729_s11, 0 }
  0x93   : > { %2673 = dma.done.wait (%p3744_p0), %s335_s2, 512  }
  0x94   : > { %2675 = vsyncadd (%p3744_p0), %s335_s2, 4294966784  ;;  %s343_s0 = sand.u32 1, %s2786_s9   ;;  %s2181_s29 = sshll.u32 %s2989_s10, 7 }
  0x95   : > { %s344_s13 = scalar_lea.sflag [#allocation6], %s343_s0  ;;  %s3001_s21 = scalar_lea.vmem [#allocation5], %s2181_s29 }
  0x96   : > { %2677 = dma.done.wait (%p3744_p0), %s344_s13, 2048  }
  0x97   : > { %2679 = vsyncadd (%p3744_p0), %s344_s13, 4294965248  ;;  %p3745_p8 = scmp.eq.s32.totalorder %s2786_s9, 0 }
  0x99   : > { %2681 = dma.done.wait (%p3745_p8), [#allocation6], 4096   ;;  %p3746_p11 = pmov %p3745_p8 }
  0x9a   : > { %p3747_p2 = pmov %p3745_p8 }
  0x9b   : > { %2683 = vsyncadd (%p3746_p11), [#allocation6], 4294963200 }
  0x9c   : > { %2685 = dma.done.wait (%p3747_p2), [#allocation9], 4096   ;;  %p3748_p12 = pmov %p3747_p2 }
  0x9d   : > { %v3016_v0 = vld [vmem:[%s3001_s21] sm:$0xff]  ;;  %v3019_v1 = vld [vmem:[%s3001_s21 + $0x8] sm:$0xff]  ;;  %v3022_v2 = vld [vmem:[%s3001_s21 + $0x10] sm:$0xff]  ;;  %vm1434_vm0 = vcmask 261120   ;;  %s2308_s25 = sshll.u32 %s2786_s9, 14  ;;  %s2040_s9 = scalar_lea.sflag [#allocation4], %s2989_s10 }
  0x9e   : > { %2687 = vsyncadd (%p3748_p12), [#allocation9], 4294963200  ;;  %v414_v3 = vunpack.c.l.bf16 %v3016_v0  ;;  %v415_v4 = vunpack.c.h.bf16 %v3016_v0  ;;  %v416_v5 = vunpack.c.l.bf16 %v3019_v1  ;;  %v3028_v6 = vld [vmem:[%s3001_s21 + $0x40] sm:$0xff]  ;;  %v407_v7 = vld [vmem:[%s3001_s21 + $0x48] sm:$0xff]  ;;  %v417_v8 = vunpack.c.h.bf16 %v3019_v1  ;;  %s3658_s14 = scalar_lea.hbm %s3716_s8, %s2308_s25  ;;  %p3749_p13 = scmp.ne.s32.totalorder %s3737_s22, 0 }
  0x9f   : > { %v3033_v9 = vld [vmem:[%s3001_s21 + $0x20] sm:$0xff]  ;;  %v430_v11 = vunpack.c.l.bf16 %v3028_v6  ;;  %v431_v12 = vunpack.c.h.bf16 %v3028_v6  ;;  %v432_v13 = vunpack.c.l.bf16 %v407_v7  ;;  %v3038_v14 = vld [vmem:[%s3001_s21 + $0x28] sm:$0xff]  ;;  %v401_v15 = vld [vmem:[%s3001_s21 + $0x18] sm:$0xff]  ;;  %v418_v16 = vunpack.c.l.bf16 %v3022_v2  ;;  %s2717_s15 = smov [#allocation10]  }
  0xa0   : > { %v446_v10 = vadd.f32 %v415_v4, %v414_v3  ;;  %v408_v17 = vld [vmem:[%s3001_s21 + $0x50] sm:$0xff]  ;;  %v3044_v18 = vld [vmem:[%s3001_s21 + $0x60] sm:$0xff]  ;;  %v409_v20 = vld [vmem:[%s3001_s21 + $0x58] sm:$0xff]  ;;  %v433_v21 = vunpack.c.h.bf16 %v407_v7  ;;  %v422_v23 = vunpack.c.l.bf16 %v3033_v9  ;;  %v419_v25 = vunpack.c.h.bf16 %v3022_v2  ;;  %s2632_s19 = sshll.u32 %s2717_s15, 4  ;;  %s2633_s19 = int_to_ptr.vmem [resolvable:$false] %s2632_s19 }
  0xa1   : > { %v464_v22 = vadd.f32 %v431_v12, %v430_v11  ;;  %v411_v24 = vld [vmem:[%s3001_s21 + $0x68] sm:$0xff]  ;;  %v423_v26 = vunpack.c.h.bf16 %v3033_v9  ;;  %v424_v27 = vunpack.c.l.bf16 %v3038_v14  ;;  %v420_v30 = vunpack.c.l.bf16 %v401_v15  ;;  %v3053_v34 = vld [vmem:[%s3001_s21 + $0x30] sm:$0xff]  ;;  %v405_v51 = vld [vmem:[%s3001_s21 + $0x38] sm:$0xff]  ;;  %s2634_s16 = scalar_lea.vmem %s2633_s19, 32768 }
  0xa2   : > { %v447_v19 = vadd.f32 %v446_v10, %v416_v5  ;;  %v2394_v28 = vld [vmem:[#allocation7 + $0x4] ss:$8 sps:$4 sm:$0xff]   ;;  %v2396_v29 = vld [vmem:[#allocation7] ss:$8 sps:$4 sm:$0xff]   ;;  %v434_v32 = vunpack.c.l.bf16 %v408_v17  ;;  %v2397_v35 = vld [vmem:[#allocation7 + $0x14] ss:$8 sps:$4 sm:$0xff]   ;;  %v425_v36 = vunpack.c.h.bf16 %v3038_v14  ;;  %v438_v38 = vunpack.c.l.bf16 %v3044_v18 }
  0xa3   : > { %v465_v33 = vadd.f32 %v464_v22, %v432_v13  ;;  %v455_v37 = vadd.f32 %v423_v26, %v422_v23  ;;  %v439_v39 = vunpack.c.h.bf16 %v3044_v18  ;;  %727 = vmatprep.subr.bf16.mxu0 %v2394_v28  ;;  %v435_v41 = vunpack.c.h.bf16 %v408_v17  ;;  %v3060_v48 = vld [vmem:[%s3001_s21 + $0x70] sm:$0xff]  ;;  %v413_v3 = vld [vmem:[%s3001_s21 + $0x78] sm:$0xff]  ;;  %v2400_v4 = vld [vmem:[#allocation7 + $0x24] ss:$8 sps:$4 sm:$0xff]  }
  0xa4   : > { %v448_v31 = vadd.f32 %v447_v19, %v417_v8  ;;  %v440_v43 = vunpack.c.l.bf16 %v411_v24  ;;  %728 = vmatpush1.bf16.xpose.msra.mxu0 %v2396_v29  ;;  %v421_v44 = vunpack.c.h.bf16 %v401_v15  ;;  %v436_v45 = vunpack.c.l.bf16 %v409_v20  ;;  %v2399_v61 = vld [vmem:[#allocation7 + $0x10] ss:$8 sps:$4 sm:$0xff]   ;;  %v2402_v23 = vld [vmem:[#allocation7 + $0x20] ss:$8 sps:$4 sm:$0xff]   ;;  %v2409_v29 = vld [vmem:[#allocation7 + $0x54] ss:$8 sps:$4 sm:$0xff]  }
  0xa5   : > { %v466_v42 = vadd.f32 %v465_v33, %v433_v21  ;;  %v426_v46 = vunpack.c.l.bf16 %v3053_v34  ;;  %v456_v47 = vadd.f32 %v455_v37, %v424_v27  ;;  %729 = vmatprep.subr.bf16.mxu0 %v2397_v35  ;;  %v441_v52 = vunpack.c.h.bf16 %v411_v24  ;;  %v2403_v24 = vld [vmem:[#allocation7 + $0x34] ss:$8 sps:$4 sm:$0xff]   ;;  %v2405_v26 = vld [vmem:[#allocation7 + $0x30] ss:$8 sps:$4 sm:$0xff]   ;;  %v2406_v27 = vld [vmem:[#allocation7 + $0x44] ss:$8 sps:$4 sm:$0xff]  }
  0xa6   : > { %v449_v40 = vadd.f32 %v448_v31, %v418_v16  ;;  %v473_v53 = vadd.f32 %v439_v39, %v438_v38  ;;  %v437_v54 = vunpack.c.h.bf16 %v409_v20  ;;  %v427_v55 = vunpack.c.h.bf16 %v3053_v34  ;;  %v2408_v28 = vld [vmem:[#allocation7 + $0x40] ss:$8 sps:$4 sm:$0xff]   ;;  %v2412_v31 = vld [vmem:[#allocation7 + $0x64] ss:$8 sps:$4 sm:$0xff]   ;;  %v2415_v33 = vld [vmem:[#allocation7 + $0x74] ss:$8 sps:$4 sm:$0xff]  }
  0xa7   : > { %v467_v50 = vadd.f32 %v466_v42, %v434_v32  ;;  %v457_v56 = vadd.f32 %v456_v47, %v425_v36  ;;  %v442_v59 = vunpack.c.l.bf16 %v3060_v48  ;;  %v428_v62 = vunpack.c.l.bf16 %v405_v51  ;;  %v2414_v32 = vld [vmem:[#allocation7 + $0x60] ss:$8 sps:$4 sm:$0xff]   ;;  %v2417_v35 = vld [vmem:[#allocation7 + $0x70] ss:$8 sps:$4 sm:$0xff]   ;;  %v2442_v36 = vld [vmem:[#allocation8 + $0x4] ss:$8 sps:$4 sm:$0xff]  }
  0xa8   : > { %v450_v49 = vadd.f32 %v449_v40, %v419_v25  ;;  %v474_v60 = vadd.f32 %v473_v53, %v440_v43  ;;  %v443_v8 = vunpack.c.h.bf16 %v3060_v48  ;;  %v429_v11 = vunpack.c.h.bf16 %v405_v51  ;;  %v2444_v37 = vld [vmem:[#allocation8] ss:$8 sps:$4 sm:$0xff]   ;;  %v2445_v38 = vld [vmem:[#allocation8 + $0x14] ss:$8 sps:$4 sm:$0xff]   ;;  %v2418_v39 = vld [vmem:[#allocation7 + $0x84] ss:$8 sps:$4 sm:$0xff]   ;;  %976 = vmatprep.subr.bf16.mxu1 %v2442_v36 }
  0xa9   : > { %v468_v58 = vadd.f32 %v467_v50, %v435_v41  ;;  %v458_v63 = vadd.f32 %v457_v56, %v426_v46  ;;  %v444_v15 = vunpack.c.l.bf16 %v413_v3  ;;  %v445_v19 = vunpack.c.h.bf16 %v413_v3  ;;  %977 = vmatpush1.bf16.xpose.msra.mxu1 %v2444_v37  ;;  %v2447_v40 = vld [vmem:[#allocation8 + $0x10] ss:$8 sps:$4 sm:$0xff]   ;;  %v2420_v41 = vld [vmem:[#allocation7 + $0x80] ss:$8 sps:$4 sm:$0xff]   ;;  %v2448_v42 = vld [vmem:[#allocation8 + $0x24] ss:$8 sps:$4 sm:$0xff]  }
  0xaa   : > { %v451_v57 = vadd.f32 %v450_v49, %v420_v30  ;;  %v475_v10 = vadd.f32 %v474_v60, %v441_v52  ;;  %v2411_v30 = vld [vmem:[#allocation7 + $0x50] ss:$8 sps:$4 sm:$0xff]   ;;  %978 = vmatprep.subr.bf16.mxu1 %v2445_v38  ;;  %v2421_v43 = vld [vmem:[#allocation7 + $0x94] ss:$8 sps:$4 sm:$0xff]   ;;  %v2424_v47 = vld [vmem:[#allocation7 + $0xa4] ss:$8 sps:$4 sm:$0xff]  }
  0xab   : > { %v469_v7 = vadd.f32 %v468_v58, %v436_v45  ;;  %v459_v12 = vadd.f32 %v458_v63, %v427_v55  ;;  %v2423_v45 = vld [vmem:[#allocation7 + $0x90] ss:$8 sps:$4 sm:$0xff]   ;;  %v2451_v46 = vld [vmem:[#allocation8 + $0x34] ss:$8 sps:$4 sm:$0xff]   ;;  %v2426_v50 = vld [vmem:[#allocation7 + $0xa0] ss:$8 sps:$4 sm:$0xff]  }
  0xac   : > { %v452_v5 = vadd.f32 %v451_v57, %v421_v44  ;;  %v476_v16 = vadd.f32 %v475_v10, %v442_v59  ;;  %730 = vmatpush1.bf16.xpose.msra.mxu0 %v2399_v61  ;;  %v2450_v44 = vld [vmem:[#allocation8 + $0x20] ss:$8 sps:$4 sm:$0xff]   ;;  %v2453_v49 = vld [vmem:[#allocation8 + $0x30] ss:$8 sps:$4 sm:$0xff]   ;;  %v2454_v51 = vld [vmem:[#allocation8 + $0x44] ss:$8 sps:$4 sm:$0xff]  }
  0xad   : > { %v470_v13 = vadd.f32 %v469_v7, %v437_v54  ;;  %v460_v17 = vadd.f32 %v459_v12, %v428_v62  ;;  %731 = vmatprep.subr.bf16.mxu0 %v2400_v4  ;;  %v2427_v52 = vld [vmem:[#allocation7 + $0xb4] ss:$8 sps:$4 sm:$0xff]   ;;  %v2456_v53 = vld [vmem:[#allocation8 + $0x40] ss:$8 sps:$4 sm:$0xff]   ;;  %v2429_v54 = vld [vmem:[#allocation7 + $0xb0] ss:$8 sps:$4 sm:$0xff]  }
  0xae   : > { %453 = vadd.xlane.f32.xlu0 %v452_v5  ;;  %v477_v20 = vadd.f32 %v476_v16, %v443_v8  ;;  %v2457_v55 = vld [vmem:[#allocation8 + $0x54] ss:$8 sps:$4 sm:$0xff]   ;;  %v2430_v56 = vld [vmem:[#allocation7 + $0xc4] ss:$8 sps:$4 sm:$0xff]   ;;  %v2459_v57 = vld [vmem:[#allocation8 + $0x50] ss:$8 sps:$4 sm:$0xff]  }
  0xaf   : > { %471 = vadd.xlane.f32.xlu1 %v470_v13  ;;  %v461_v21 = vadd.f32 %v460_v17, %v429_v11  ;;  %v2432_v58 = vld [vmem:[#allocation7 + $0xc0] ss:$8 sps:$4 sm:$0xff]   ;;  %v2460_v59 = vld [vmem:[#allocation8 + $0x64] ss:$8 sps:$4 sm:$0xff]   ;;  %v2433_v60 = vld [vmem:[#allocation7 + $0xd4] ss:$8 sps:$4 sm:$0xff]  }
  0xb0   : > { %v478_v22 = vadd.f32 %v477_v20, %v444_v15  ;;  %v2462_v61 = vld [vmem:[#allocation8 + $0x60] ss:$8 sps:$4 sm:$0xff]   ;;  %v2435_v62 = vld [vmem:[#allocation7 + $0xd0] ss:$8 sps:$4 sm:$0xff]   ;;  %v2463_v63 = vld [vmem:[#allocation8 + $0x74] ss:$8 sps:$4 sm:$0xff]  }
  0xb1   : > { %979 = vmatpush1.bf16.xpose.msra.mxu1 %v2447_v40  ;;  %v2436_v3 = vld [vmem:[#allocation7 + $0xe4] ss:$8 sps:$4 sm:$0xff]   ;;  %v2465_v4 = vld [vmem:[#allocation8 + $0x70] ss:$8 sps:$4 sm:$0xff]   ;;  %v2438_v5 = vld [vmem:[#allocation7 + $0xe0] ss:$8 sps:$4 sm:$0xff]  }
  0xb2   : > { %462 = vadd.xlane.f32.xlu0 %v461_v21  ;;  %v479_v25 = vadd.f32 %v478_v22, %v445_v19  ;;  %980 = vmatprep.subr.bf16.mxu1 %v2448_v42  ;;  %v2466_v7 = vld [vmem:[#allocation8 + $0x84] ss:$8 sps:$4 sm:$0xff]   ;;  %v2439_v8 = vld [vmem:[#allocation7 + $0xf4] ss:$8 sps:$4 sm:$0xff]   ;;  %v2468_v10 = vld [vmem:[#allocation8 + $0x80] ss:$8 sps:$4 sm:$0xff]  }
  0xb3   : > { %v2441_v11 = vld [vmem:[#allocation7 + $0xf0] ss:$8 sps:$4 sm:$0xff]   ;;  %v2469_v12 = vld [vmem:[#allocation8 + $0x94] ss:$8 sps:$4 sm:$0xff]   ;;  %v2472_v15 = vld [vmem:[#allocation8 + $0xa4] ss:$8 sps:$4 sm:$0xff]  }
  0xb4   : > { %480 = vadd.xlane.f32.xlu1 %v479_v25  ;;  %732 = vmatpush1.bf16.xpose.msra.mxu0 %v2402_v23  ;;  %v2471_v13 = vld [vmem:[#allocation8 + $0x90] ss:$8 sps:$4 sm:$0xff]   ;;  %v2474_v16 = vld [vmem:[#allocation8 + $0xa0] ss:$8 sps:$4 sm:$0xff]   ;;  %v2475_v17 = vld [vmem:[#allocation8 + $0xb4] ss:$8 sps:$4 sm:$0xff]  }
  0xb5   : > { %733 = vmatprep.subr.bf16.mxu0 %v2403_v24  ;;  %v2477_v19 = vld [vmem:[#allocation8 + $0xb0] ss:$8 sps:$4 sm:$0xff]   ;;  %v2478_v20 = vld [vmem:[#allocation8 + $0xc4] ss:$8 sps:$4 sm:$0xff]   ;;  %v2480_v21 = vld [vmem:[#allocation8 + $0xc0] ss:$8 sps:$4 sm:$0xff]  }
  0xb6   : > { %v2481_v22 = vld [vmem:[#allocation8 + $0xd4] ss:$8 sps:$4 sm:$0xff]   ;;  %v3068_v24 = vld [vmem:[%s2993_s17] sm:$0xff]  ;;  %v3071_v25 = vld [vmem:[%s2993_s17 + $0x8] sm:$0xff] }
  0xb7   : > { %v2483_v40 = vld [vmem:[#allocation8 + $0xd0] ss:$8 sps:$4 sm:$0xff]  }
  0xb9   : > { %981 = vmatpush1.bf16.xpose.msra.mxu1 %v2450_v44 }
  0xba   : > { %982 = vmatprep.subr.bf16.mxu1 %v2451_v46 }
  0xbc   : > { %734 = vmatpush1.bf16.xpose.msra.mxu0 %v2405_v26 }
  0xbd   : > { %735 = vmatprep.subr.bf16.mxu0 %v2406_v27  ;;  %v487_v27 = vunpack.c.l.bf16 %v3068_v24 }
  0xc1   : > { %983 = vmatpush1.bf16.xpose.msra.mxu1 %v2453_v49 }
  0xc2   : > { %984 = vmatprep.subr.bf16.mxu1 %v2454_v51 }
  0xc4   : > { %736 = vmatpush1.bf16.xpose.msra.mxu0 %v2408_v28  ;;  %v3075_v28 = vld [vmem:[%s2993_s17 + $0x10] sm:$0xff] }
  0xc5   : > { %737 = vmatprep.subr.bf16.mxu0 %v2409_v29  ;;  %v491_v37 = vunpack.c.l.bf16 %v3075_v28  ;;  %v492_v38 = vunpack.c.h.bf16 %v3075_v28 }
  0xc9   : > { %985 = vmatpush1.bf16.xpose.msra.mxu1 %v2456_v53 }
  0xca   : > { %986 = vmatprep.subr.bf16.mxu1 %v2457_v55 }
  0xcc   : > { %738 = vmatpush1.bf16.xpose.msra.mxu0 %v2411_v30  ;;  %v488_v30 = vunpack.c.h.bf16 %v3068_v24 }
  0xcd   : > { %739 = vmatprep.subr.bf16.mxu0 %v2412_v31  ;;  %v489_v31 = vunpack.c.l.bf16 %v3071_v25 }
  0xd1   : > { %987 = vmatpush1.bf16.xpose.msra.mxu1 %v2459_v57 }
  0xd2   : > { %988 = vmatprep.subr.bf16.mxu1 %v2460_v59 }
  0xd4   : > { %740 = vmatpush1.bf16.xpose.msra.mxu0 %v2414_v32  ;;  %v490_v32 = vunpack.c.h.bf16 %v3071_v25 }
  0xd5   : > { %741 = vmatprep.subr.bf16.mxu0 %v2415_v33  ;;  %v3081_v33 = vld [vmem:[%s2993_s17 + $0x18] sm:$0xff] }
  0xd6   : > { %v494_v42 = vunpack.c.h.bf16 %v3081_v33 }
  0xd9   : > { %989 = vmatpush1.bf16.xpose.msra.mxu1 %v2462_v61  ;;  %v2486_v61 = vld [vmem:[#allocation8 + $0xe0] ss:$8 sps:$4 sm:$0xff]  }
  0xda   : > { %990 = vmatprep.subr.bf16.mxu1 %v2463_v63 }
  0xdc   : > { %742 = vmatpush1.bf16.xpose.msra.mxu0 %v2417_v35 }
  0xdd   : > { %743 = vmatprep.subr.bf16.mxu0 %v2418_v39 }
  0xe1   : > { %991 = vmatpush1.bf16.xpose.msra.mxu1 %v2465_v4 }
  0xe2   : > { %992 = vmatprep.subr.bf16.mxu1 %v2466_v7 }
  0xe4   : > { %744 = vmatpush1.bf16.xpose.msra.mxu0 %v2420_v41  ;;  %v493_v41 = vunpack.c.l.bf16 %v3081_v33 }
  0xe5   : > { %745 = vmatprep.subr.bf16.mxu0 %v2421_v43  ;;  %v2484_v43 = vld [vmem:[#allocation8 + $0xe4] ss:$8 sps:$4 sm:$0xff]  }
  0xe9   : > { %993 = vmatpush1.bf16.xpose.msra.mxu1 %v2468_v10 }
  0xea   : > { %994 = vmatprep.subr.bf16.mxu1 %v2469_v12 }
  0xec   : > { %746 = vmatpush1.bf16.xpose.msra.mxu0 %v2423_v45 }
  0xed   : > { %747 = vmatprep.subr.bf16.mxu0 %v2424_v47 }
  0xf1   : > { %995 = vmatpush1.bf16.xpose.msra.mxu1 %v2471_v13 }
  0xf2   : > { %996 = vmatprep.subr.bf16.mxu1 %v2472_v15 }
  0xf4   : > { %748 = vmatpush1.bf16.xpose.msra.mxu0 %v2426_v50 }
  0xf5   : > { %749 = vmatprep.subr.bf16.mxu0 %v2427_v52 }
  0xf9   : > { %997 = vmatpush1.bf16.xpose.msra.mxu1 %v2474_v16 }
  0xfa   : > { %998 = vmatprep.subr.bf16.mxu1 %v2475_v17 }
  0xfc   : > { %750 = vmatpush1.bf16.xpose.msra.mxu0 %v2429_v54 }
  0xfd   : > { %751 = vmatprep.subr.bf16.mxu0 %v2430_v56 }
 0x101   : > { %999 = vmatpush1.bf16.xpose.msra.mxu1 %v2477_v19  ;;  %v2487_v19 = vld [vmem:[#allocation8 + $0xf4] ss:$8 sps:$4 sm:$0xff]  }
 0x102   : > { %1000 = vmatprep.subr.bf16.mxu1 %v2478_v20  ;;  %v2489_v20 = vld [vmem:[#allocation8 + $0xf0] ss:$8 sps:$4 sm:$0xff]  }
 0x104   : > { %752 = vmatpush1.bf16.xpose.msra.mxu0 %v2432_v58 }
 0x105   : > { %753 = vmatprep.subr.bf16.mxu0 %v2433_v60 }
 0x109   : > { %1001 = vmatpush1.bf16.xpose.msra.mxu1 %v2480_v21  ;;  %v717_v21 = vlaneseq }
 0x10a   : > { %1002 = vmatprep.subr.bf16.mxu1 %v2481_v22 }
 0x10b   : > { %v718_v22 = vshrl.u32 %v717_v21, 7 }
 0x10c   : > { %754 = vmatpush1.bf16.xpose.msra.mxu0 %v2435_v62 }
 0x10d   : > { %755 = vmatprep.subr.bf16.mxu0 %v2436_v3 }
 0x111   : > { %1003 = vmatpush1.bf16.xpose.msra.mxu1 %v2483_v40 }
 0x112   : > { %1004 = vmatprep.subr.bf16.mxu1 %v2484_v43  ;;  %v2250_v43 = vcombine.high %v3068_v24, %v3071_v25 }
 0x114   : > { %756 = vmatpush1.bf16.xpose.msra.mxu0 %v2438_v5 }
 0x115   : > { %757 = vmatprep.subr.bf16.mxu0 %v2439_v8 }
 0x119   : > { %1005 = vmatpush1.bf16.xpose.msra.mxu1 %v2486_v61  ;;  %v1029_v61 = vld [vmem:[%s3714_s6] sm:$0xff] }
 0x11a   : > { %1006 = vmatprep.subr.bf16.mxu1 %v2487_v19 }
 0x11c   : > { %758 = vmatpush1.bf16.xpose.msra.mxu0 %v2441_v11 }
 0x11d   : > { %1153 = vmatprep.subr.bf16.mxu0 %v2250_v43  ;;  %v1036_v43 = vld [vmem:[%s3714_s6 + $0x38] sm:$0xff] }
 0x121   : > { %1007 = vmatpush1.bf16.xpose.msra.mxu1 %v2489_v20 }
 0x13b   : > { %v454_v23 = vpop.xlane.xlu0 %453 }
 0x13c   : > { %v472_v26 = vpop.xlane.xlu1 %471  ;;  %v483_v29 = vmul.f32 0.0009765625, %v454_v23  ;;  %v3087_v23 = vsub.s32 0, %v718_v22 }
 0x13d   : > { %v485_v36 = vmul.f32 0.0009765625, %v472_v26  ;;  %v555_v26 = vld [vmem:[%s3711_s3] sm:$0x3] }
 0x13e   : > { %v495_v44 = vmul.f32 %v487_v27, %v483_v29  ;;  %v496_v45 = vmul.f32 %v488_v30, %v483_v29  ;;  %v723_v27 = vsub.s32 1, %v718_v22  ;;  %v720_v29 = vrot.slane %v555_v26, %v3087_v23 }
 0x13f   : > { %v463_v35 = vpop.xlane.xlu0 %462  ;;  %v499_v51 = vmul.f32 %v491_v37, %v485_v36  ;;  %v500_v52 = vmul.f32 %v492_v38, %v485_v36 }
 0x140   : > { %v484_v39 = vmul.f32 0.0009765625, %v463_v35  ;;  %v724_v30 = vrot.slane %v555_v26, %v723_v27 }
 0x141   : > { %v481_v49 = vpop.xlane.xlu1 %480 }
 0x142   : > { %v497_v46 = vmul.f32 %v489_v31, %v484_v39  ;;  %v498_v47 = vmul.f32 %v490_v32, %v484_v39  ;;  %v486_v50 = vmul.f32 0.0009765625, %v481_v49  ;;  %v2253_v49 = vcombine.low %v3016_v0, %v3033_v9 }
 0x144   : > { %v503_v53 = vadd.f32 %v497_v46, %v495_v44  ;;  %v512_v54 = vadd.f32 %v498_v47, %v496_v45  ;;  %v501_v55 = vmul.f32 %v493_v41, %v486_v50  ;;  %v502_v56 = vmul.f32 %v494_v42, %v486_v50 }
 0x145   : > { %v2249_v44 = vcombine.low %v3068_v24, %v3071_v25  ;;  %v2252_v45 = vcombine.high %v3075_v28, %v3081_v33  ;;  %v2251_v46 = vcombine.low %v3075_v28, %v3081_v33  ;;  %v2254_v47 = vcombine.high %v3016_v0, %v3033_v9  ;;  %v804_v24 = vld [vmem:[%s3713_s5] sm:$0x3] }
 0x146   : > { %v504_v57 = vadd.f32 %v503_v53, %v499_v51  ;;  %v513_v58 = vadd.f32 %v512_v54, %v500_v52  ;;  %v969_v25 = vrot.slane %v804_v24, %v3087_v23  ;;  %v973_v50 = vrot.slane %v804_v24, %v723_v27  ;;  %v1033_v27 = vld [vmem:[%s3714_s6 + $0x20] sm:$0xff] }
 0x147   : > { %2309 = vmatprep.subr.bf16.mxu1 %v2254_v47 }
 0x148   : > { %v505_v59 = vadd.f32 %v504_v57, %v501_v55  ;;  %v514_v60 = vadd.f32 %v513_v58, %v502_v56 }
 0x14a   : > { %v506_v62 = vrot.slane %v505_v59, 4  ;;  %v515_v63 = vrot.slane %v514_v60, 4 }
 0x14c   : > { %v507_v3 = vadd.f32 %v506_v62, %v505_v59  ;;  %v516_v4 = vadd.f32 %v515_v63, %v514_v60  ;;  %v1030_v62 = vld [vmem:[%s3714_s6 + $0x8] sm:$0xff]  ;;  %v1031_v63 = vld [vmem:[%s3714_s6 + $0x10] sm:$0xff] }
 0x14e   : > { %v517_v5 = vrot.slane %v516_v4, 2  ;;  %v508_v7 = vrot.slane %v507_v3, 2 }
 0x150   : > { %v518_v8 = vadd.f32 %v517_v5, %v516_v4  ;;  %v509_v10 = vadd.f32 %v508_v7, %v507_v3  ;;  %v1032_v3 = vld [vmem:[%s3714_s6 + $0x18] sm:$0xff]  ;;  %v1045_v4 = vunpack.c.l.bf16 %v1029_v61  ;;  %v1047_v5 = vunpack.c.l.bf16 %v1030_v62 }
 0x152   : > { %v519_v11 = vrot.slane %v518_v8, 1  ;;  %v510_v12 = vrot.slane %v509_v10, 1 }
 0x154   : > { %v520_v13 = vadd.f32 %v519_v11, %v518_v8  ;;  %v511_v15 = vadd.f32 %v510_v12, %v509_v10  ;;  %v1046_v8 = vunpack.c.h.bf16 %v1029_v61  ;;  %v1048_v10 = vunpack.c.h.bf16 %v1030_v62  ;;  %v1039_v61 = vld [vmem:[%s3714_s6 + $0x50] sm:$0xff]  ;;  %v1040_v62 = vld [vmem:[%s3714_s6 + $0x58] sm:$0xff] }
 0x155   : > { %v1050_v11 = vunpack.c.h.bf16 %v1031_v63  ;;  %v1052_v12 = vunpack.c.h.bf16 %v1032_v3 }
 0x156   : > { %v522_v16 = vpack.c.bf16 %v520_v13, %v520_v13  ;;  %v521_v17 = vpack.c.bf16 %v511_v15, %v511_v15 }
 0x158   : > { %759 = vmatprep.mubr.bf16.mxu0 %v522_v16 }
 0x159   : > { %760 = vmatmul.mubr.bf16.vlgmr.msra.gmra.mrb[0].mxu0 %v521_v17 }
 0x15a   : > { %1154 = vmatpush1.bf16.xpose.msra.mxu0 %v2249_v44 }
 0x15b   : > { %1155 = vmatprep.subr.bf16.mxu0 %v2252_v45  ;;  %v1053_v45 = vunpack.c.l.bf16 %v1033_v27 }
 0x162   : > { %1156 = vmatpush1.bf16.xpose.msra.mxu0 %v2251_v46 }
 0x163   : > { %1459 = vmatprep.subr.bf16.mxu0 %v2254_v47 }
 0x22c   : > { %v761_v31 = vpop.f32.mrb[0].mxu0 }
 0x22d   : > { %v762_v32 = vadd.f32 %v761_v31, %v720_v29  ;;  %v763_v35 = vpop.f32.mrb[1].mxu0  ;;  %v1049_v31 = vunpack.c.l.bf16 %v1031_v63 }
 0x22e   : > { %v764_v36 = vadd.f32 %v763_v35, %v724_v30  ;;  %v765_v37 = vpop.f32.mrb[2].mxu0 }
 0x22f   : > { %v768_v38 = vmax.f32 %v762_v32, 0.0  ;;  %v766_v39 = vpop.f32.mrb[3].mxu0  ;;  %v1051_v32 = vunpack.c.l.bf16 %v1032_v3 }
 0x230   : > { %v769_v40 = vmax.f32 %v764_v36, 0.0  ;;  %v1054_v36 = vunpack.c.h.bf16 %v1033_v27 }
 0x231   : > { %v770_v42 = vpack.c.bf16 %v768_v38, %v768_v38 }
 0x232   : > { %v771_v41 = vpack.c.bf16 %v769_v40, %v769_v40 }
 0x234   : > { %1008 = vmatprep.mubr.bf16.mxu1 %v771_v41 }
 0x235   : > { %1009 = vmatmul.mubr.bf16.vlgmr.msra.gmra.mrb[0].mxu1 %v770_v42  ;;  %v1035_v42 = vld [vmem:[%s3714_s6 + $0x30] sm:$0xff] }
 0x236   : > { %2311 = vmatpush1.bf16.msra.mxu1 %v2253_v49  ;;  %v1058_v24 = vunpack.c.h.bf16 %v1035_v42 }
 0x308   : > { %v1010_v51 = vpop.f32.mrb[0].mxu1 }
 0x309   : > { %v1011_v28 = vadd.f32 %v1010_v51, %v969_v25  ;;  %v1012_v33 = vpop.f32.mrb[1].mxu1  ;;  %v1060_v25 = vunpack.c.h.bf16 %v1036_v43 }
 0x30a   : > { %v1013_v52 = vadd.f32 %v1012_v33, %v973_v50  ;;  %v1014_v53 = vpop.f32.mrb[2].mxu1  ;;  %v1037_v33 = vld [vmem:[%s3714_s6 + $0x40] sm:$0xff] }
 0x30b   : > { %v1017_v54 = vsub.f32 0.0, %v1011_v28  ;;  %v1015_v55 = vpop.f32.mrb[3].mxu1  ;;  %v1061_v3 = vunpack.c.l.bf16 %v1037_v33 }
 0x30c   : > { %v1018_v56 = vsub.f32 0.0, %v1013_v52  ;;  %v1038_v52 = vld [vmem:[%s3714_s6 + $0x48] sm:$0xff]  ;;  %v1059_v55 = vunpack.c.l.bf16 %v1036_v43 }
 0x30d   : > { %v1019_v57 = vmul.f32 1.442695, %v1017_v54  ;;  %v1057_v54 = vunpack.c.l.bf16 %v1035_v42 }
 0x30e   : > { %v1021_v0 = vmul.f32 1.442695, %v1018_v56 }
 0x30f   : > { %2494 = vpow2.f32 %v1019_v57  ;;  %v1062_v57 = vunpack.c.h.bf16 %v1037_v33  ;;  %v2262_v33 = vcombine.high %v3028_v6, %v3044_v18 }
 0x310   : > { %2496 = vpow2.f32 %v1021_v0  ;;  %v1064_v0 = vunpack.c.h.bf16 %v1038_v52 }
 0x311   : > { %2310 = vmatprep.subr.bf16.mxu1 %v2262_v33 }
 0x319   : > { %v2495_v9 = vpop.eup %2494 }
 0x31a   : > { %v2497_v58 = vpop.eup %2496  ;;  %v1023_v59 = vadd.f32 1.0, %v2495_v9 }
 0x31b   : > { %v1024_v60 = vadd.f32 1.0, %v2497_v58 }
 0x31c   : > { %2498 = vrcp.f32 %v1023_v59 }
 0x31d   : > { %2500 = vrcp.f32 %v1024_v60 }
 0x326   : > { %v2499_v7 = vpop.eup %2498 }
 0x327   : > { %v2501_v13 = vpop.eup %2500  ;;  %v3122_v15 = vrot.slane %v2499_v7, %v3087_v23  ;;  %v1066_v7 = vunpack.c.h.bf16 %v1039_v61 }
 0x328   : > { %v3125_v16 = vrot.slane %v2501_v13, %v3087_v23  ;;  %v1034_v23 = vld [vmem:[%s3714_s6 + $0x28] sm:$0xff] }
 0x329   : > { %v1085_v17 = vmul.f32 %v3122_v15, %v1045_v4  ;;  %v1087_v19 = vmul.f32 %v3122_v15, %v1047_v5  ;;  %v1056_v37 = vunpack.c.h.bf16 %v1034_v23  ;;  %v1089_v38 = vmul.f32 %v3122_v15, %v1049_v31 }
 0x32a   : > { %v1086_v20 = vmul.f32 %v3125_v16, %v1046_v8  ;;  %v1088_v21 = vmul.f32 %v3125_v16, %v1048_v10  ;;  %v1090_v22 = vmul.f32 %v3125_v16, %v1050_v11  ;;  %v1092_v26 = vmul.f32 %v3125_v16, %v1052_v12 }
 0x32b   : > { %v1117_v30 = vpack.c.bf16 %v1087_v19, %v1085_v17  ;;  %v1091_v39 = vmul.f32 %v3122_v15, %v1051_v32  ;;  %v1094_v40 = vmul.f32 %v3125_v16, %v1054_v36  ;;  %v1096_v41 = vmul.f32 %v3125_v16, %v1056_v37  ;;  %v1041_v17 = vld [vmem:[%s3714_s6 + $0x60] sm:$0xff]  ;;  %v1042_v19 = vld [vmem:[%s3714_s6 + $0x68] sm:$0xff]  ;;  %v1044_v36 = vld [vmem:[%s3714_s6 + $0x78] sm:$0xff] }
 0x32c   : > { %v1118_v29 = vpack.c.bf16 %v1088_v21, %v1086_v20  ;;  %v1120_v35 = vpack.c.bf16 %v1092_v26, %v1090_v22  ;;  %v1055_v46 = vunpack.c.l.bf16 %v1034_v23  ;;  %v1098_v51 = vmul.f32 %v3125_v16, %v1058_v24 }
 0x32d   : > { %v1119_v44 = vpack.c.bf16 %v1091_v39, %v1089_v38  ;;  %v1122_v47 = vpack.c.bf16 %v1096_v41, %v1094_v40  ;;  %v1100_v28 = vmul.f32 %v3125_v16, %v1060_v25  ;;  %v1097_v9 = vmul.f32 %v3122_v15, %v1057_v54  ;;  %v1260_v54 = vld [vmem:[%s3715_s7 + $0x10] sm:$0xff] }
 0x32e   : > { %1185 = vmatprep.mubr.bf16.mxu0 %v1118_v29  ;;  %v1095_v50 = vmul.f32 %v3122_v15, %v1055_v46  ;;  %v1099_v58 = vmul.f32 %v3122_v15, %v1059_v55  ;;  %v1102_v59 = vmul.f32 %v3125_v16, %v1062_v57  ;;  %v1104_v60 = vmul.f32 %v3125_v16, %v1064_v0  ;;  %v1264_v55 = vld [vmem:[%s3715_s7 + $0x30] sm:$0xff]  ;;  %v1266_v57 = vld [vmem:[%s3715_s7 + $0x40] sm:$0xff]  ;;  %v1267_v0 = vld [vmem:[%s3715_s7 + $0x48] sm:$0xff] }
 0x32f   : > { %1186 = vmatmul.mubr.bf16.vlgmr.msra.gmra.mrb[4].mxu0 %v1117_v30  ;;  %v1124_v56 = vpack.c.bf16 %v1100_v28, %v1098_v51  ;;  %v1063_v4 = vunpack.c.l.bf16 %v1038_v52  ;;  %v1068_v8 = vunpack.c.h.bf16 %v1040_v62  ;;  %v1101_v10 = vmul.f32 %v3122_v15, %v1061_v3 }
 0x330   : > { %1193 = vmatprep.mubr.bf16.mxu0 %v1120_v35  ;;  %1460 = vmatpush1.bf16.msra.mxu0 %v2253_v49  ;;  %v1093_v49 = vmul.f32 %v3122_v15, %v1053_v45  ;;  %v1123_v63 = vpack.c.bf16 %v1099_v58, %v1097_v9  ;;  %v1126_v5 = vpack.c.bf16 %v1104_v60, %v1102_v59  ;;  %v1065_v21 = vunpack.c.l.bf16 %v1039_v61  ;;  %v1043_v35 = vld [vmem:[%s3714_s6 + $0x70] sm:$0xff]  ;;  %v1269_v58 = vld [vmem:[%s3715_s7 + $0x58] sm:$0xff] }
 0x331   : > { %v1103_v11 = vmul.f32 %v3122_v15, %v1063_v4  ;;  %v1106_v12 = vmul.f32 %v3125_v16, %v1066_v7  ;;  %v1108_v13 = vmul.f32 %v3125_v16, %v1068_v8  ;;  %v1067_v22 = vunpack.c.l.bf16 %v1040_v62  ;;  %1461 = vmatprep.subr.bf16.mxu0 %v2262_v33  ;;  %v1268_v9 = vld [vmem:[%s3715_s7 + $0x50] sm:$0xff]  ;;  %v1270_v8 = vld [vmem:[%s3715_s7 + $0x60] sm:$0xff] }
 0x332   : > { %v1121_v53 = vpack.c.bf16 %v1095_v50, %v1093_v49  ;;  %v1070_v27 = vunpack.c.h.bf16 %v1041_v17  ;;  %v1072_v23 = vunpack.c.h.bf16 %v1042_v19  ;;  %v1105_v29 = vmul.f32 %v3122_v15, %v1065_v21  ;;  %v2502_v62 = vld [vmem:[%s3001_s21 + $0x10] sm:$0xff] }
 0x333   : > { %v1125_v20 = vpack.c.bf16 %v1103_v11, %v1101_v10  ;;  %v1128_v26 = vpack.c.bf16 %v1108_v13, %v1106_v12  ;;  %v1107_v30 = vmul.f32 %v3122_v15, %v1067_v22  ;;  %v1069_v38 = vunpack.c.l.bf16 %v1041_v17  ;;  %v1271_v10 = vld [vmem:[%s3715_s7 + $0x68] sm:$0xff] }
 0x334   : > { %v1110_v31 = vmul.f32 %v3125_v16, %v1070_v27  ;;  %v1112_v32 = vmul.f32 %v3125_v16, %v1072_v23  ;;  %v1071_v39 = vunpack.c.l.bf16 %v1042_v19  ;;  %v1074_v41 = vunpack.c.h.bf16 %v1043_v35 }
 0x335   : > { %v1127_v37 = vpack.c.bf16 %v1107_v30, %v1105_v29  ;;  %v1076_v42 = vunpack.c.h.bf16 %v1044_v36  ;;  %v1109_v43 = vmul.f32 %v3122_v15, %v1069_v38  ;;  %v1073_v24 = vunpack.c.l.bf16 %v1043_v35  ;;  %v2505_v35 = vld [vmem:[%s3001_s21 + $0x28] sm:$0xff] }
 0x336   : > { %v1130_v40 = vpack.c.bf16 %v1112_v32, %v1110_v31  ;;  %v1114_v45 = vmul.f32 %v3125_v16, %v1074_v41  ;;  %v1075_v25 = vunpack.c.l.bf16 %v1044_v36  ;;  %v2261_v52 = vcombine.low %v3028_v6, %v3044_v18  ;;  %v1258_v6 = vld [vmem:[%s3715_s7] sm:$0xff]  ;;  %v1259_v18 = vld [vmem:[%s3715_s7 + $0x8] sm:$0xff] }
 0x337   : > { %1194 = vmatmul.mubr.bf16.gmra.mrb[8].mxu0 %v1119_v44  ;;  %v1111_v44 = vmul.f32 %v3122_v15, %v1071_v39  ;;  %v1116_v46 = vmul.f32 %v3125_v16, %v1076_v42  ;;  %v1113_v50 = vmul.f32 %v3122_v15, %v1073_v24  ;;  %v2716_v16 = vmov 0   ;;  %v2504_v32 = vld [vmem:[%s3001_s21 + $0x8] sm:$0xff] }
 0x338   : > { %1201 = vmatprep.mubr.bf16.mxu0 %v1122_v47  ;;  %v1115_v51 = vmul.f32 %v3122_v15, %v1075_v25  ;;  %1521 = vmatprep.mubr.bf16.mxu1 %v2716_v16  ;;  %v2258_v15 = vcombine.high %v3022_v2, %v3053_v34  ;;  %v1262_v2 = vld [vmem:[%s3715_s7 + $0x20] sm:$0xff]  ;;  %v2255_v36 = vcombine.low %v2504_v32, %v2505_v35  ;;  %v2506_v39 = vld [vmem:[%s3001_s21 + $0x48] sm:$0xff] }
 0x339   : > { %v1129_v47 = vpack.c.bf16 %v1111_v44, %v1109_v43  ;;  %v1132_v49 = vpack.c.bf16 %v1116_v46, %v1114_v45  ;;  %1462 = vmatpush1.bf16.msra.mxu0 %v2261_v52  ;;  %2312 = vmatpush1.bf16.msra.mxu1 %v2261_v52  ;;  %v2508_v43 = vld [vmem:[%s3001_s21 + $0x18] sm:$0xff] }
 0x33a   : > { %v1131_v28 = vpack.c.bf16 %v1115_v51, %v1113_v50  ;;  %2392 = vset.pattern.permute.xlu0 %v2716_v16  ;;  %2393 = vset.pattern.permute.xlu1 %v2716_v16  ;;  %v2509_v44 = vld [vmem:[%s3001_s21 + $0x38] sm:$0xff] }
 0x33b   : > { %1685 = vmatprep.subr.bf16.mxu0 %v2258_v15  ;;  %1276 = vperm.xlu0 %2392, %v1258_v6   ;;  %v2260_v45 = vcombine.high %v2508_v43, %v2509_v44 }
 0x33c   : > { %1281 = vperm.xlu1 %2393, %v1259_v18  }
 0x33f   : > { %1202 = vmatmul.mubr.bf16.gmra.mrb[12].mxu0 %v1121_v53  ;;  %v2256_v53 = vcombine.high %v3019_v1, %v3038_v14  ;;  %v1261_v1 = vld [vmem:[%s3715_s7 + $0x18] sm:$0xff]  ;;  %v1263_v14 = vld [vmem:[%s3715_s7 + $0x28] sm:$0xff]  ;;  %1321 = vperm.xlu0 %2392, %v1267_v0  }
 0x340   : > { %1209 = vmatprep.mubr.bf16.mxu0 %v1124_v56  ;;  %1286 = vperm.xlu1 %2393, %v1260_v54   ;;  %v1265_v56 = vld [vmem:[%s3715_s7 + $0x38] sm:$0xff] }
 0x341   : > { %1572 = vmatprep.subr.bf16.mxu1 %v2256_v53  ;;  %v2510_v0 = vld [vmem:[%s3001_s21 + $0x58] sm:$0xff] }
 0x343   : > { %1331 = vperm.xlu0 %2392, %v1269_v58  }
 0x344   : > { %1291 = vperm.xlu1 %2393, %v1261_v1  }
 0x347   : > { %1210 = vmatmul.mubr.bf16.gmra.mrb[16].mxu0 %v1123_v63  ;;  %v2257_v63 = vcombine.low %v2502_v62, %v3053_v34  ;;  %1341 = vperm.xlu0 %2392, %v1271_v10  }
 0x348   : > { %1217 = vmatprep.mubr.bf16.mxu0 %v1126_v5  ;;  %1296 = vperm.xlu1 %2393, %v1262_v2   ;;  %v2503_v5 = vld [vmem:[%s3001_s21 + $0x50] sm:$0xff] }
 0x349   : > { %v2266_v7 = vcombine.high %v2503_v5, %v3060_v48  ;;  %v2265_v34 = vcombine.low %v2503_v5, %v3060_v48  ;;  %v1273_v48 = vld [vmem:[%s3715_s7 + $0x78] sm:$0xff] }
 0x34b   : > { %1351 = vperm.xlu0 %2392, %v1273_v48  }
 0x34c   : > { %1301 = vperm.xlu1 %2393, %v1263_v14  }
 0x34f   : > { %1218 = vmatmul.mubr.bf16.gmra.mrb[20].mxu0 %v1125_v20  ;;  %v1272_v20 = vld [vmem:[%s3715_s7 + $0x70] sm:$0xff] }
 0x350   : > { %1225 = vmatprep.mubr.bf16.mxu0 %v1128_v26  ;;  %1306 = vperm.xlu1 %2393, %v1264_v55  }
 0x354   : > { %1311 = vperm.xlu1 %2393, %v1265_v56  }
 0x357   : > { %1226 = vmatmul.mubr.bf16.gmra.mrb[24].mxu0 %v1127_v37 }
 0x358   : > { %1233 = vmatprep.mubr.bf16.mxu0 %v1130_v40  ;;  %1316 = vperm.xlu1 %2393, %v1266_v57   ;;  %v2507_v40 = vld [vmem:[%s3001_s21 + $0x68] sm:$0xff]  ;;  %v2259_v57 = vcombine.low %v2508_v43, %v2509_v44 }
 0x359   : > { %v2264_v41 = vcombine.high %v2506_v39, %v2507_v40  ;;  %v2263_v42 = vcombine.low %v2506_v39, %v2507_v40 }
 0x35c   : > { %1326 = vperm.xlu1 %2393, %v1268_v9   ;;  %v2511_v9 = vld [vmem:[%s3001_s21 + $0x78] sm:$0xff]  ;;  %s2184_s21 = sshll.u32 %s2989_s10, 10 }
 0x35d   : > { %v2268_v58 = vcombine.high %v2510_v0, %v2511_v9  ;;  %s3377_s11 = scalar_lea.vmem [#allocation10], %s2184_s21 }
 0x35e   : > { %s2053_s24 = sshll.u32 %s3377_s11, 4  ;;  %s3660_s24 = int_to_ptr.vmem [resolvable:$true] %s2053_s24 }
 0x35f   : > { %1234 = vmatmul.mubr.bf16.gmra.mrb[28].mxu0 %v1129_v47  ;;  %s2628_s23 = scalar_lea.vmem %s3660_s24, 16384  ;;  %p2635_p4 = scmp.lt.s32.totalorder %s3660_s24, %s2633_s19 }
 0x360   : > { %1241 = vmatprep.mubr.bf16.mxu0 %v1132_v49  ;;  %1336 = vperm.xlu1 %2393, %v1270_v8   ;;  %p2629_p1 = scmp.ne.s32.totalorder %s3660_s24, %s2628_s23  ;;  %p2636_p5 = scmp.lt.s32.totalorder %s2634_s16, %s2628_s23 }
 0x362   : > { %p2630_p6 = pnand %p2629_p1, %p3749_p13  ;;  %p2637_p3 = por %p2636_p5, %p2635_p4 }
 0x364   : > { %1346 = vperm.xlu1 %2393, %v1272_v20   ;;  %p2631_p10 = pneg %p2630_p6 }
 0x366   : > { %p2638_p7 = pnand %p2637_p3, %p2631_p10 }
 0x367   : > { %1242 = vmatmul.mubr.bf16.gmra.mrb[32].mxu0 %v1131_v28 }
 0x368   : > { %1491 = vmatprep.mubr.bf16.mxu0 %v2716_v16 }
 0x3ba   : > { %v3371_v62 = vpop.permute.xlu0 %1276 }
 0x402   : > { %v1187_v59 = vpop.f32.mrb[4].mxu0 }
 0x403   : > { %v1189_v60 = vpop.f32.mrb[5].mxu0 }
 0x404   : > { %v1190_v61 = vpop.f32.mrb[6].mxu0  ;;  %v3366_v60 = vpop.permute.xlu1 %1281 }
 0x405   : > { %v3245_v3 = vpack.c.bf16 %v1190_v61, %v1187_v59  ;;  %v1192_v4 = vpop.f32.mrb[7].mxu0  ;;  %v2267_v59 = vcombine.low %v2510_v0, %v2511_v9 }
 0x407   : > { %2269 = vmatmul.mubr.msk.bf16.vlgmr.msra.gmra.mrb[36].mxu0 %vm1434_vm0, %v3245_v3 }
 0x408   : > { %1501 = vmatprep.mubr.bf16.mxu0 %v2716_v16  ;;  %1686 = vmatpush1.bf16.msra.mxu0 %v2257_v63  ;;  %v3368_v61 = vpop.permute.xlu1 %1286 }
 0x409   : > { %1687 = vmatprep.subr.bf16.mxu0 %v2266_v7 }
 0x40a   : > { %v1195_v11 = vpop.f32.mrb[8].mxu0 }
 0x40b   : > { %v1197_v12 = vpop.f32.mrb[9].mxu0 }
 0x40c   : > { %v1198_v13 = vpop.f32.mrb[10].mxu0  ;;  %1688 = vmatpush1.bf16.msra.mxu0 %v2265_v34  ;;  %v3373_v63 = vpop.permute.xlu1 %1291 }
 0x40d   : > { %v3259_v17 = vpack.c.bf16 %v1198_v13, %v1195_v11  ;;  %v1200_v19 = vpop.f32.mrb[11].mxu0 }
 0x40f   : > { %2270 = vmatmul.mubr.msk.bf16.gmra.mrb[40].mxu0 %vm1434_vm0, %v3259_v17 }
 0x410   : > { %1511 = vmatprep.mubr.bf16.mxu0 %v2716_v16  ;;  %v3384_v11 = vpop.permute.xlu1 %1296 }
 0x412   : > { %v1203_v21 = vpop.f32.mrb[12].mxu0 }
 0x413   : > { %v1205_v22 = vpop.f32.mrb[13].mxu0 }
 0x414   : > { %v1206_v26 = vpop.f32.mrb[14].mxu0  ;;  %v3391_v22 = vpop.permute.xlu1 %1301 }
 0x415   : > { %v3270_v27 = vpack.c.bf16 %v1206_v26, %v1203_v21  ;;  %v1208_v23 = vpop.f32.mrb[15].mxu0 }
 0x417   : > { %2271 = vmatmul.mubr.msk.bf16.gmra.mrb[44].mxu0 %vm1434_vm0, %v3270_v27 }
 0x418   : > { %1717 = vmatprep.mubr.bf16.mxu0 %v2716_v16 }
 0x41a   : > { %v1211_v29 = vpop.f32.mrb[16].mxu0 }
 0x41b   : > { %v1213_v30 = vpop.f32.mrb[17].mxu0 }
 0x41c   : > { %v1214_v31 = vpop.f32.mrb[18].mxu0  ;;  %v3398_v30 = vpop.permute.xlu1 %1306 }
 0x41d   : > { %v3277_v37 = vpack.c.bf16 %v1214_v31, %v1211_v29  ;;  %v1216_v38 = vpop.f32.mrb[19].mxu0 }
 0x41f   : > { %2272 = vmatmul.mubr.msk.bf16.vlgmr.msra.gmra.mrb[4].mxu1 %vm1434_vm0, %v3277_v37  ;;  %2285 = vmatmul.mubr.msk.bf16.vlgmr.msra.gmra.mrb[48].mxu0 %vm1434_vm0, %v3245_v3 }
 0x420   : > { %1573 = vmatpush1.bf16.msra.mxu1 %v2255_v36  ;;  %1531 = vmatprep.mubr.bf16.mxu1 %v2716_v16  ;;  %v3407_v38 = vpop.permute.xlu1 %1311 }
 0x421   : > { %1727 = vmatprep.mubr.bf16.mxu0 %v2716_v16  ;;  %1574 = vmatprep.subr.bf16.mxu1 %v2264_v41 }
 0x422   : > { %v1219_v46 = vpop.f32.mrb[20].mxu0 }
 0x423   : > { %v1221_v47 = vpop.f32.mrb[21].mxu0 }
 0x424   : > { %v1222_v24 = vpop.f32.mrb[22].mxu0  ;;  %1575 = vmatpush1.bf16.msra.mxu1 %v2263_v42 }
 0x425   : > { %v3289_v25 = vpack.c.bf16 %v1222_v24, %v1219_v46  ;;  %v1224_v49 = vpop.f32.mrb[23].mxu0  ;;  %1798 = vmatprep.subr.bf16.mxu1 %v2260_v45 }
 0x427   : > { %2273 = vmatmul.mubr.msk.bf16.gmra.mrb[8].mxu1 %vm1434_vm0, %v3289_v25  ;;  %2286 = vmatmul.mubr.msk.bf16.gmra.mrb[52].mxu0 %vm1434_vm0, %v3259_v17 }
 0x428   : > { %1541 = vmatprep.mubr.bf16.mxu1 %v2716_v16  ;;  %1737 = vmatprep.mubr.bf16.mxu0 %v2716_v16 }
 0x42a   : > { %v1227_v50 = vpop.f32.mrb[24].mxu0 }
 0x42b   : > { %v1229_v51 = vpop.f32.mrb[25].mxu0 }
 0x42c   : > { %v1230_v28 = vpop.f32.mrb[26].mxu0 }
 0x42d   : > { %v3297_v33 = vpack.c.bf16 %v1230_v28, %v1227_v50  ;;  %v1232_v52 = vpop.f32.mrb[27].mxu0 }
 0x42e   : > { %v3425_v52 = vpop.permute.xlu1 %1316 }
 0x42f   : > { %2274 = vmatmul.mubr.msk.bf16.gmra.mrb[12].mxu1 %vm1434_vm0, %v3297_v33  ;;  %2287 = vmatmul.mubr.msk.bf16.gmra.mrb[56].mxu0 %vm1434_vm0, %v3270_v27 }
 0x430   : > { %1551 = vmatprep.mubr.bf16.mxu1 %v2716_v16  ;;  %1747 = vmatprep.mubr.bf16.mxu0 %v2716_v16 }
 0x432   : > { %v1235_v15 = vpop.f32.mrb[28].mxu0 }
 0x433   : > { %v1237_v53 = vpop.f32.mrb[29].mxu0 }
 0x434   : > { %v1238_v6 = vpop.f32.mrb[30].mxu0 }
 0x435   : > { %v1256_v18 = vpack.c.bf16 %v1238_v6, %v1235_v15  ;;  %v1240_v54 = vpop.f32.mrb[31].mxu0  ;;  %v3427_v15 = vpop.permute.xlu0 %1321 }
 0x437   : > { %2275 = vmatmul.mubr.msk.bf16.gmra.mrb[16].mxu1 %vm1434_vm0, %v1256_v18  ;;  %2288 = vmatmul.mubr.msk.bf16.gmra.mrb[60].mxu0 %vm1434_vm0, %v3277_v37 }
 0x438   : > { %1561 = vmatprep.mubr.bf16.mxu1 %v2716_v16  ;;  %1757 = vmatprep.mubr.bf16.mxu0 %v2716_v16 }
 0x43a   : > { %v1243_v1 = vpop.f32.mrb[32].mxu0 }
 0x43b   : > { %v1245_v2 = vpop.f32.mrb[33].mxu0 }
 0x43c   : > { %v1246_v14 = vpop.f32.mrb[34].mxu0 }
 0x43d   : > { %v1257_v55 = vpack.c.bf16 %v1246_v14, %v1243_v1  ;;  %v1248_v56 = vpop.f32.mrb[35].mxu0 }
 0x43f   : > { %2276 = vmatmul.mubr.msk.bf16.gmra.mrb[20].mxu1 %vm1434_vm0, %v1257_v55  ;;  %2289 = vmatmul.mubr.msk.bf16.gmra.mrb[64].mxu0 %vm1434_vm0, %v3289_v25 }
 0x440   : > { %1604 = vmatprep.mubr.bf16.mxu1 %v2716_v16  ;;  %1767 = vmatprep.mubr.bf16.mxu0 %v2716_v16 }
 0x447   : > { %2277 = vmatmul.mubr.msk.bf16.vlgmr.msra.gmra.mrb[24].mxu1 %vm1434_vm0, %v3245_v3  ;;  %2290 = vmatmul.mubr.msk.bf16.gmra.mrb[68].mxu0 %vm1434_vm0, %v3297_v33 }
 0x448   : > { %1799 = vmatpush1.bf16.msra.mxu1 %v2259_v57  ;;  %1614 = vmatprep.mubr.bf16.mxu1 %v2716_v16 }
 0x449   : > { %1777 = vmatprep.mubr.bf16.mxu0 %v2716_v16  ;;  %1800 = vmatprep.subr.bf16.mxu1 %v2268_v58 }
 0x44c   : > { %1801 = vmatpush1.bf16.msra.mxu1 %v2267_v59 }
 0x44f   : > { %2278 = vmatmul.mubr.msk.bf16.gmra.mrb[28].mxu1 %vm1434_vm0, %v3259_v17  ;;  %2291 = vmatmul.mubr.msk.bf16.gmra.mrb[72].mxu0 %vm1434_vm0, %v1256_v18 }
 0x450   : > { %1624 = vmatprep.mubr.bf16.mxu1 %v2716_v16  ;;  %1787 = vmatprep.mubr.bf16.mxu0 %v2716_v16 }
 0x457   : > { %2279 = vmatmul.mubr.msk.bf16.gmra.mrb[32].mxu1 %vm1434_vm0, %v3270_v27  ;;  %2292 = vmatmul.mubr.msk.bf16.gmra.mrb[76].mxu0 %vm1434_vm0, %v1257_v55 }
 0x458   : > { %1634 = vmatprep.mubr.bf16.mxu1 %v2716_v16 }
 0x45f   : > { %2280 = vmatmul.mubr.msk.bf16.gmra.mrb[36].mxu1 %vm1434_vm0, %v3277_v37 }
 0x460   : > { %1644 = vmatprep.mubr.bf16.mxu1 %v2716_v16 }
 0x467   : > { %2281 = vmatmul.mubr.msk.bf16.gmra.mrb[40].mxu1 %vm1434_vm0, %v3289_v25 }
 0x468   : > { %1654 = vmatprep.mubr.bf16.mxu1 %v2716_v16 }
 0x46f   : > { %2282 = vmatmul.mubr.msk.bf16.gmra.mrb[44].mxu1 %vm1434_vm0, %v3297_v33 }
 0x470   : > { %1664 = vmatprep.mubr.bf16.mxu1 %v2716_v16 }
 0x477   : > { %2283 = vmatmul.mubr.msk.bf16.gmra.mrb[48].mxu1 %vm1434_vm0, %v1256_v18 }
 0x478   : > { %1674 = vmatprep.mubr.bf16.mxu1 %v2716_v16 }
 0x47f   : > { %2284 = vmatmul.mubr.msk.bf16.gmra.mrb[52].mxu1 %vm1434_vm0, %v1257_v55 }
 0x480   : > { %1830 = vmatprep.mubr.bf16.mxu1 %v2716_v16 }
 0x487   : > { %2293 = vmatmul.mubr.msk.bf16.vlgmr.msra.gmra.mrb[56].mxu1 %vm1434_vm0, %v3245_v3 }
 0x488   : > { %1840 = vmatprep.mubr.bf16.mxu1 %v2716_v16 }
 0x48f   : > { %2294 = vmatmul.mubr.msk.bf16.gmra.mrb[60].mxu1 %vm1434_vm0, %v3259_v17 }
 0x490   : > { %1850 = vmatprep.mubr.bf16.mxu1 %v2716_v16 }
 0x497   : > { %2295 = vmatmul.mubr.msk.bf16.gmra.mrb[64].mxu1 %vm1434_vm0, %v3270_v27 }
 0x498   : > { %1860 = vmatprep.mubr.bf16.mxu1 %v2716_v16 }
 0x49f   : > { %2296 = vmatmul.mubr.msk.bf16.gmra.mrb[68].mxu1 %vm1434_vm0, %v3277_v37 }
 0x4a0   : > { %1870 = vmatprep.mubr.bf16.mxu1 %v2716_v16 }
 0x4a7   : > { %2297 = vmatmul.mubr.msk.bf16.gmra.mrb[72].mxu1 %vm1434_vm0, %v3289_v25 }
 0x4a8   : > { %1880 = vmatprep.mubr.bf16.mxu1 %v2716_v16 }
 0x4af   : > { %2298 = vmatmul.mubr.msk.bf16.gmra.mrb[76].mxu1 %vm1434_vm0, %v3297_v33 }
 0x4b0   : > { %1890 = vmatprep.mubr.bf16.mxu1 %v2716_v16 }
 0x4b7   : > { %2299 = vmatmul.mubr.msk.bf16.gmra.mrb[80].mxu1 %vm1434_vm0, %v1256_v18 }
 0x4b8   : > { %1900 = vmatprep.mubr.bf16.mxu1 %v2716_v16 }
 0x4bf   : > { %2300 = vmatmul.mubr.msk.bf16.gmra.mrb[84].mxu1 %vm1434_vm0, %v1257_v55 }
 0x4da   : > { %v1493_v3 = vpop.f32.mrb[36].mxu0 }
 0x4db   : > { %v1494_v4 = vadd.f32 %v1493_v3, %v3371_v62  ;;  %v1495_v5 = vpop.f32.mrb[37].mxu0 }
 0x4dc   : > { %v1496_v7 = vadd.f32 %v1495_v5, %v3371_v62  ;;  %v1497_v8 = vpop.f32.mrb[38].mxu0  ;;  %v3445_v5 = vpop.permute.xlu1 %1326 }
 0x4dd   : > { %1911 = vst [vmem:[%s3377_s11] sm:$0xff] %v1494_v4  ;;  %v1498_v16 = vadd.f32 %v1497_v8, %v3366_v60  ;;  %v1499_v10 = vpop.f32.mrb[39].mxu0 }
 0x4de   : > { %1912 = vst [vmem:[%s3377_s11 + $0x8] sm:$0xff] %v1496_v7  ;;  %v1500_v34 = vadd.f32 %v1499_v10, %v3366_v60  ;;  %v3447_v7 = vpop.permute.xlu0 %1331 }
 0x4df   : > { %1919 = vst [vmem:[%s3377_s11 + $0x40] sm:$0xff] %v1498_v16 }
 0x4e0   : > { %1920 = vst [vmem:[%s3377_s11 + $0x48] sm:$0xff] %v1500_v34 }
 0x4e2   : > { %v1503_v12 = vpop.f32.mrb[40].mxu0 }
 0x4e3   : > { %v1504_v13 = vadd.f32 %v1503_v12, %v3368_v61  ;;  %v1505_v17 = vpop.f32.mrb[41].mxu0 }
 0x4e4   : > { %v1506_v19 = vadd.f32 %v1505_v17, %v3368_v61  ;;  %v1507_v20 = vpop.f32.mrb[42].mxu0 }
 0x4e5   : > { %1927 = vst [vmem:[%s3377_s11 + $0x80] sm:$0xff] %v1504_v13  ;;  %v1508_v48 = vadd.f32 %v1507_v20, %v3373_v63  ;;  %v1509_v21 = vpop.f32.mrb[43].mxu0 }
 0x4e6   : > { %1928 = vst [vmem:[%s3377_s11 + $0x88] sm:$0xff] %v1506_v19  ;;  %v1510_v26 = vadd.f32 %v1509_v21, %v3373_v63 }
 0x4e7   : > { %1935 = vst [vmem:[%s3377_s11 + $0xc0] sm:$0xff] %v1508_v48 }
 0x4e8   : > { %1936 = vst [vmem:[%s3377_s11 + $0xc8] sm:$0xff] %v1510_v26 }
 0x4ea   : > { %v1513_v27 = vpop.f32.mrb[44].mxu0 }
 0x4eb   : > { %v1514_v23 = vadd.f32 %v1513_v27, %v3384_v11  ;;  %v1515_v29 = vpop.f32.mrb[45].mxu0 }
 0x4ec   : > { %v1516_v31 = vadd.f32 %v1515_v29, %v3384_v11  ;;  %v1517_v32 = vpop.f32.mrb[46].mxu0 }
 0x4ed   : > { %1943 = vst [vmem:[%s3377_s11 + $0x100] sm:$0xff] %v1514_v23  ;;  %v1518_v35 = vadd.f32 %v1517_v32, %v3391_v22  ;;  %v1519_v36 = vpop.f32.mrb[47].mxu0  ;;  %v3465_v32 = vpop.permute.xlu1 %1336 }
 0x4ee   : > { %1944 = vst [vmem:[%s3377_s11 + $0x108] sm:$0xff] %v1516_v31  ;;  %v1520_v37 = vadd.f32 %v1519_v36, %v3391_v22 }
 0x4ef   : > { %1951 = vst [vmem:[%s3377_s11 + $0x140] sm:$0xff] %v1518_v35  ;;  %v3467_v35 = vpop.permute.xlu0 %1341 }
 0x4f0   : > { %1952 = vst [vmem:[%s3377_s11 + $0x148] sm:$0xff] %v1520_v37 }
 0x4f2   : > { %v1523_v39 = vpop.f32.mrb[4].mxu1  ;;  %v1719_v40 = vpop.f32.mrb[48].mxu0 }
 0x4f3   : > { %v1524_v41 = vadd.f32 %v1523_v39, %v3398_v30  ;;  %v1720_v42 = vadd.f32 %v1719_v40, %v3371_v62  ;;  %v1525_v43 = vpop.f32.mrb[5].mxu1  ;;  %v1721_v44 = vpop.f32.mrb[49].mxu0 }
 0x4f4   : > { %v1526_v45 = vadd.f32 %v1525_v43, %v3398_v30  ;;  %v1722_v46 = vadd.f32 %v1721_v44, %v3371_v62  ;;  %v1527_v47 = vpop.f32.mrb[6].mxu1  ;;  %v1723_v24 = vpop.f32.mrb[50].mxu0 }
 0x4f5   : > { %1959 = vst [vmem:[%s3377_s11 + $0x180] sm:$0xff] %v1524_v41  ;;  %1915 = vst [vmem:[%s3377_s11 + $0x20] sm:$0xff] %v1720_v42  ;;  %v1528_v25 = vadd.f32 %v1527_v47, %v3407_v38  ;;  %v1724_v49 = vadd.f32 %v1723_v24, %v3366_v60  ;;  %v1529_v50 = vpop.f32.mrb[7].mxu1  ;;  %v1725_v51 = vpop.f32.mrb[51].mxu0 }
 0x4f6   : > { %1960 = vst [vmem:[%s3377_s11 + $0x188] sm:$0xff] %v1526_v45  ;;  %1916 = vst [vmem:[%s3377_s11 + $0x28] sm:$0xff] %v1722_v46  ;;  %v1530_v28 = vadd.f32 %v1529_v50, %v3407_v38  ;;  %v1726_v33 = vadd.f32 %v1725_v51, %v3366_v60 }
 0x4f7   : > { %1967 = vst [vmem:[%s3377_s11 + $0x1c0] sm:$0xff] %v1528_v25  ;;  %1923 = vst [vmem:[%s3377_s11 + $0x60] sm:$0xff] %v1724_v49 }
 0x4f8   : > { %1968 = vst [vmem:[%s3377_s11 + $0x1c8] sm:$0xff] %v1530_v28  ;;  %1924 = vst [vmem:[%s3377_s11 + $0x68] sm:$0xff] %v1726_v33  ;;  %v3485_v28 = vpop.permute.xlu1 %1346  ;;  %v3487_v33 = vpop.permute.xlu0 %1351 }
 0x4fa   : > { %v1533_v53 = vpop.f32.mrb[8].mxu1  ;;  %v1729_v6 = vpop.f32.mrb[52].mxu0 }
 0x4fb   : > { %v1534_v18 = vadd.f32 %v1533_v53, %v3425_v52  ;;  %v1730_v54 = vadd.f32 %v1729_v6, %v3368_v61  ;;  %v1535_v1 = vpop.f32.mrb[9].mxu1  ;;  %v1731_v2 = vpop.f32.mrb[53].mxu0 }
 0x4fc   : > { %v1536_v14 = vadd.f32 %v1535_v1, %v3425_v52  ;;  %v1732_v55 = vadd.f32 %v1731_v2, %v3368_v61  ;;  %v1537_v56 = vpop.f32.mrb[10].mxu1  ;;  %v1733_v57 = vpop.f32.mrb[54].mxu0 }
 0x4fd   : > { %1975 = vst [vmem:[%s3377_s11 + $0x200] sm:$0xff] %v1534_v18  ;;  %1931 = vst [vmem:[%s3377_s11 + $0xa0] sm:$0xff] %v1730_v54  ;;  %v1538_v0 = vadd.f32 %v1537_v56, %v3427_v15  ;;  %v1734_v9 = vadd.f32 %v1733_v57, %v3373_v63  ;;  %v1539_v58 = vpop.f32.mrb[11].mxu1  ;;  %v1735_v59 = vpop.f32.mrb[55].mxu0 }
 0x4fe   : > { %1976 = vst [vmem:[%s3377_s11 + $0x208] sm:$0xff] %v1536_v14  ;;  %1932 = vst [vmem:[%s3377_s11 + $0xa8] sm:$0xff] %v1732_v55  ;;  %v1540_v3 = vadd.f32 %v1539_v58, %v3427_v15  ;;  %v1736_v4 = vadd.f32 %v1735_v59, %v3373_v63 }
 0x4ff   : > { %1983 = vst [vmem:[%s3377_s11 + $0x240] sm:$0xff] %v1538_v0  ;;  %1939 = vst [vmem:[%s3377_s11 + $0xe0] sm:$0xff] %v1734_v9 }
 0x500   : > { %1984 = vst [vmem:[%s3377_s11 + $0x248] sm:$0xff] %v1540_v3  ;;  %1940 = vst [vmem:[%s3377_s11 + $0xe8] sm:$0xff] %v1736_v4 }
 0x502   : > { %v1543_v8 = vpop.f32.mrb[12].mxu1  ;;  %v1739_v16 = vpop.f32.mrb[56].mxu0 }
 0x503   : > { %v1544_v10 = vadd.f32 %v1543_v8, %v3445_v5  ;;  %v1740_v34 = vadd.f32 %v1739_v16, %v3384_v11  ;;  %v1545_v12 = vpop.f32.mrb[13].mxu1  ;;  %v1741_v13 = vpop.f32.mrb[57].mxu0 }
 0x504   : > { %v1546_v17 = vadd.f32 %v1545_v12, %v3445_v5  ;;  %v1742_v19 = vadd.f32 %v1741_v13, %v3384_v11  ;;  %v1547_v20 = vpop.f32.mrb[14].mxu1  ;;  %v1743_v48 = vpop.f32.mrb[58].mxu0 }
 0x505   : > { %1991 = vst [vmem:[%s3377_s11 + $0x280] sm:$0xff] %v1544_v10  ;;  %1947 = vst [vmem:[%s3377_s11 + $0x120] sm:$0xff] %v1740_v34  ;;  %v1548_v21 = vadd.f32 %v1547_v20, %v3447_v7  ;;  %v1744_v26 = vadd.f32 %v1743_v48, %v3391_v22  ;;  %v1549_v27 = vpop.f32.mrb[15].mxu1  ;;  %v1745_v23 = vpop.f32.mrb[59].mxu0 }
 0x506   : > { %1992 = vst [vmem:[%s3377_s11 + $0x288] sm:$0xff] %v1546_v17  ;;  %1948 = vst [vmem:[%s3377_s11 + $0x128] sm:$0xff] %v1742_v19  ;;  %v1550_v29 = vadd.f32 %v1549_v27, %v3447_v7  ;;  %v1746_v31 = vadd.f32 %v1745_v23, %v3391_v22 }
 0x507   : > { %1999 = vst [vmem:[%s3377_s11 + $0x2c0] sm:$0xff] %v1548_v21  ;;  %1955 = vst [vmem:[%s3377_s11 + $0x160] sm:$0xff] %v1744_v26 }
 0x508   : > { %2000 = vst [vmem:[%s3377_s11 + $0x2c8] sm:$0xff] %v1550_v29  ;;  %1956 = vst [vmem:[%s3377_s11 + $0x168] sm:$0xff] %v1746_v31 }
 0x50a   : > { %v1553_v36 = vpop.f32.mrb[16].mxu1  ;;  %v1749_v37 = vpop.f32.mrb[60].mxu0 }
 0x50b   : > { %v1554_v39 = vadd.f32 %v1553_v36, %v3465_v32  ;;  %v1750_v40 = vadd.f32 %v1749_v37, %v3398_v30  ;;  %v1555_v41 = vpop.f32.mrb[17].mxu1  ;;  %v1751_v42 = vpop.f32.mrb[61].mxu0 }
 0x50c   : > { %v1556_v43 = vadd.f32 %v1555_v41, %v3465_v32  ;;  %v1752_v44 = vadd.f32 %v1751_v42, %v3398_v30  ;;  %v1557_v45 = vpop.f32.mrb[18].mxu1  ;;  %v1753_v46 = vpop.f32.mrb[62].mxu0 }
 0x50d   : > { %2007 = vst [vmem:[%s3377_s11 + $0x300] sm:$0xff] %v1554_v39  ;;  %1963 = vst [vmem:[%s3377_s11 + $0x1a0] sm:$0xff] %v1750_v40  ;;  %v1558_v47 = vadd.f32 %v1557_v45, %v3467_v35  ;;  %v1754_v24 = vadd.f32 %v1753_v46, %v3407_v38  ;;  %v1559_v25 = vpop.f32.mrb[19].mxu1  ;;  %v1755_v49 = vpop.f32.mrb[63].mxu0 }
 0x50e   : > { %2008 = vst [vmem:[%s3377_s11 + $0x308] sm:$0xff] %v1556_v43  ;;  %1964 = vst [vmem:[%s3377_s11 + $0x1a8] sm:$0xff] %v1752_v44  ;;  %v1560_v50 = vadd.f32 %v1559_v25, %v3467_v35  ;;  %v1756_v51 = vadd.f32 %v1755_v49, %v3407_v38 }
 0x50f   : > { %2015 = vst [vmem:[%s3377_s11 + $0x340] sm:$0xff] %v1558_v47  ;;  %1971 = vst [vmem:[%s3377_s11 + $0x1e0] sm:$0xff] %v1754_v24 }
 0x510   : > { %2016 = vst [vmem:[%s3377_s11 + $0x348] sm:$0xff] %v1560_v50  ;;  %1972 = vst [vmem:[%s3377_s11 + $0x1e8] sm:$0xff] %v1756_v51 }
 0x512   : > { %v1563_v53 = vpop.f32.mrb[20].mxu1  ;;  %v1759_v6 = vpop.f32.mrb[64].mxu0 }
 0x513   : > { %v1564_v18 = vadd.f32 %v1563_v53, %v3485_v28  ;;  %v1760_v54 = vadd.f32 %v1759_v6, %v3425_v52  ;;  %v1565_v1 = vpop.f32.mrb[21].mxu1  ;;  %v1761_v2 = vpop.f32.mrb[65].mxu0 }
 0x514   : > { %v1566_v14 = vadd.f32 %v1565_v1, %v3485_v28  ;;  %v1762_v55 = vadd.f32 %v1761_v2, %v3425_v52  ;;  %v1567_v56 = vpop.f32.mrb[22].mxu1  ;;  %v1763_v57 = vpop.f32.mrb[66].mxu0 }
 0x515   : > { %2023 = vst [vmem:[%s3377_s11 + $0x380] sm:$0xff] %v1564_v18  ;;  %1979 = vst [vmem:[%s3377_s11 + $0x220] sm:$0xff] %v1760_v54  ;;  %v1568_v0 = vadd.f32 %v1567_v56, %v3487_v33  ;;  %v1764_v9 = vadd.f32 %v1763_v57, %v3427_v15  ;;  %v1569_v58 = vpop.f32.mrb[23].mxu1  ;;  %v1765_v59 = vpop.f32.mrb[67].mxu0 }
 0x516   : > { %2024 = vst [vmem:[%s3377_s11 + $0x388] sm:$0xff] %v1566_v14  ;;  %1980 = vst [vmem:[%s3377_s11 + $0x228] sm:$0xff] %v1762_v55  ;;  %v1570_v3 = vadd.f32 %v1569_v58, %v3487_v33  ;;  %v1766_v4 = vadd.f32 %v1765_v59, %v3427_v15 }
 0x517   : > { %2031 = vst [vmem:[%s3377_s11 + $0x3c0] sm:$0xff] %v1568_v0  ;;  %1987 = vst [vmem:[%s3377_s11 + $0x260] sm:$0xff] %v1764_v9 }
 0x518   : > { %2032 = vst [vmem:[%s3377_s11 + $0x3c8] sm:$0xff] %v1570_v3  ;;  %1988 = vst [vmem:[%s3377_s11 + $0x268] sm:$0xff] %v1766_v4 }
 0x51a   : > { %v1606_v8 = vpop.f32.mrb[24].mxu1  ;;  %v1769_v16 = vpop.f32.mrb[68].mxu0 }
 0x51b   : > { %v1607_v10 = vadd.f32 %v1606_v8, %v3371_v62  ;;  %v1770_v34 = vadd.f32 %v1769_v16, %v3445_v5  ;;  %v1608_v12 = vpop.f32.mrb[25].mxu1  ;;  %v1771_v13 = vpop.f32.mrb[69].mxu0 }
 0x51c   : > { %v1609_v17 = vadd.f32 %v1608_v12, %v3371_v62  ;;  %v1772_v19 = vadd.f32 %v1771_v13, %v3445_v5  ;;  %v1610_v20 = vpop.f32.mrb[26].mxu1  ;;  %v1773_v48 = vpop.f32.mrb[70].mxu0 }
 0x51d   : > { %1913 = vst [vmem:[%s3377_s11 + $0x10] sm:$0xff] %v1607_v10  ;;  %1995 = vst [vmem:[%s3377_s11 + $0x2a0] sm:$0xff] %v1770_v34  ;;  %v1611_v21 = vadd.f32 %v1610_v20, %v3366_v60  ;;  %v1774_v26 = vadd.f32 %v1773_v48, %v3447_v7  ;;  %v1612_v27 = vpop.f32.mrb[27].mxu1  ;;  %v1775_v23 = vpop.f32.mrb[71].mxu0 }
 0x51e   : > { %1914 = vst [vmem:[%s3377_s11 + $0x18] sm:$0xff] %v1609_v17  ;;  %1996 = vst [vmem:[%s3377_s11 + $0x2a8] sm:$0xff] %v1772_v19  ;;  %v1613_v29 = vadd.f32 %v1612_v27, %v3366_v60  ;;  %v1776_v31 = vadd.f32 %v1775_v23, %v3447_v7 }
 0x51f   : > { %1921 = vst [vmem:[%s3377_s11 + $0x50] sm:$0xff] %v1611_v21  ;;  %2003 = vst [vmem:[%s3377_s11 + $0x2e0] sm:$0xff] %v1774_v26 }
 0x520   : > { %1922 = vst [vmem:[%s3377_s11 + $0x58] sm:$0xff] %v1613_v29  ;;  %2004 = vst [vmem:[%s3377_s11 + $0x2e8] sm:$0xff] %v1776_v31 }
 0x522   : > { %v1616_v36 = vpop.f32.mrb[28].mxu1  ;;  %v1779_v37 = vpop.f32.mrb[72].mxu0 }
 0x523   : > { %v1617_v39 = vadd.f32 %v1616_v36, %v3368_v61  ;;  %v1780_v40 = vadd.f32 %v1779_v37, %v3465_v32  ;;  %v1618_v41 = vpop.f32.mrb[29].mxu1  ;;  %v1781_v42 = vpop.f32.mrb[73].mxu0 }
 0x524   : > { %v1619_v43 = vadd.f32 %v1618_v41, %v3368_v61  ;;  %v1782_v44 = vadd.f32 %v1781_v42, %v3465_v32  ;;  %v1620_v45 = vpop.f32.mrb[30].mxu1  ;;  %v1783_v46 = vpop.f32.mrb[74].mxu0 }
 0x525   : > { %1929 = vst [vmem:[%s3377_s11 + $0x90] sm:$0xff] %v1617_v39  ;;  %2011 = vst [vmem:[%s3377_s11 + $0x320] sm:$0xff] %v1780_v40  ;;  %v1621_v47 = vadd.f32 %v1620_v45, %v3373_v63  ;;  %v1784_v24 = vadd.f32 %v1783_v46, %v3467_v35  ;;  %v1622_v25 = vpop.f32.mrb[31].mxu1  ;;  %v1785_v49 = vpop.f32.mrb[75].mxu0 }
 0x526   : > { %1930 = vst [vmem:[%s3377_s11 + $0x98] sm:$0xff] %v1619_v43  ;;  %2012 = vst [vmem:[%s3377_s11 + $0x328] sm:$0xff] %v1782_v44  ;;  %v1623_v50 = vadd.f32 %v1622_v25, %v3373_v63  ;;  %v1786_v51 = vadd.f32 %v1785_v49, %v3467_v35 }
 0x527   : > { %1937 = vst [vmem:[%s3377_s11 + $0xd0] sm:$0xff] %v1621_v47  ;;  %2019 = vst [vmem:[%s3377_s11 + $0x360] sm:$0xff] %v1784_v24 }
 0x528   : > { %1938 = vst [vmem:[%s3377_s11 + $0xd8] sm:$0xff] %v1623_v50  ;;  %2020 = vst [vmem:[%s3377_s11 + $0x368] sm:$0xff] %v1786_v51 }
 0x52a   : > { %v1626_v53 = vpop.f32.mrb[32].mxu1  ;;  %v1789_v6 = vpop.f32.mrb[76].mxu0 }
 0x52b   : > { %v1627_v18 = vadd.f32 %v1626_v53, %v3384_v11  ;;  %v1790_v54 = vadd.f32 %v1789_v6, %v3485_v28  ;;  %v1628_v1 = vpop.f32.mrb[33].mxu1  ;;  %v1791_v2 = vpop.f32.mrb[77].mxu0 }
 0x52c   : > { %v1629_v14 = vadd.f32 %v1628_v1, %v3384_v11  ;;  %v1792_v55 = vadd.f32 %v1791_v2, %v3485_v28  ;;  %v1630_v56 = vpop.f32.mrb[34].mxu1  ;;  %v1793_v57 = vpop.f32.mrb[78].mxu0 }
 0x52d   : > { %1945 = vst [vmem:[%s3377_s11 + $0x110] sm:$0xff] %v1627_v18  ;;  %2027 = vst [vmem:[%s3377_s11 + $0x3a0] sm:$0xff] %v1790_v54  ;;  %v1631_v0 = vadd.f32 %v1630_v56, %v3391_v22  ;;  %v1794_v9 = vadd.f32 %v1793_v57, %v3487_v33  ;;  %v1632_v58 = vpop.f32.mrb[35].mxu1  ;;  %v1795_v59 = vpop.f32.mrb[79].mxu0 }
 0x52e   : > { %1946 = vst [vmem:[%s3377_s11 + $0x118] sm:$0xff] %v1629_v14  ;;  %2028 = vst [vmem:[%s3377_s11 + $0x3a8] sm:$0xff] %v1792_v55  ;;  %v1633_v3 = vadd.f32 %v1632_v58, %v3391_v22  ;;  %v1796_v4 = vadd.f32 %v1795_v59, %v3487_v33 }
 0x52f   : > { %1953 = vst [vmem:[%s3377_s11 + $0x150] sm:$0xff] %v1631_v0  ;;  %2035 = vst [vmem:[%s3377_s11 + $0x3e0] sm:$0xff] %v1794_v9 }
 0x530   : > { %1954 = vst [vmem:[%s3377_s11 + $0x158] sm:$0xff] %v1633_v3  ;;  %2036 = vst [vmem:[%s3377_s11 + $0x3e8] sm:$0xff] %v1796_v4 }
 0x532   : > { %v1636_v8 = vpop.f32.mrb[36].mxu1 }
 0x533   : > { %v1637_v16 = vadd.f32 %v1636_v8, %v3398_v30  ;;  %v1638_v10 = vpop.f32.mrb[37].mxu1 }
 0x534   : > { %v1639_v34 = vadd.f32 %v1638_v10, %v3398_v30  ;;  %v1640_v12 = vpop.f32.mrb[38].mxu1 }
 0x535   : > { %1961 = vst [vmem:[%s3377_s11 + $0x190] sm:$0xff] %v1637_v16  ;;  %v1641_v13 = vadd.f32 %v1640_v12, %v3407_v38  ;;  %v1642_v17 = vpop.f32.mrb[39].mxu1 }
 0x536   : > { %1962 = vst [vmem:[%s3377_s11 + $0x198] sm:$0xff] %v1639_v34  ;;  %v1643_v19 = vadd.f32 %v1642_v17, %v3407_v38 }
 0x537   : > { %1969 = vst [vmem:[%s3377_s11 + $0x1d0] sm:$0xff] %v1641_v13 }
 0x538   : > { %1970 = vst [vmem:[%s3377_s11 + $0x1d8] sm:$0xff] %v1643_v19 }
 0x53a   : > { %v1646_v20 = vpop.f32.mrb[40].mxu1 }
 0x53b   : > { %v1647_v48 = vadd.f32 %v1646_v20, %v3425_v52  ;;  %v1648_v21 = vpop.f32.mrb[41].mxu1 }
 0x53c   : > { %v1649_v26 = vadd.f32 %v1648_v21, %v3425_v52  ;;  %v1650_v27 = vpop.f32.mrb[42].mxu1 }
 0x53d   : > { %1977 = vst [vmem:[%s3377_s11 + $0x210] sm:$0xff] %v1647_v48  ;;  %v1651_v23 = vadd.f32 %v1650_v27, %v3427_v15  ;;  %v1652_v29 = vpop.f32.mrb[43].mxu1 }
 0x53e   : > { %1978 = vst [vmem:[%s3377_s11 + $0x218] sm:$0xff] %v1649_v26  ;;  %v1653_v31 = vadd.f32 %v1652_v29, %v3427_v15 }
 0x53f   : > { %1985 = vst [vmem:[%s3377_s11 + $0x250] sm:$0xff] %v1651_v23 }
 0x540   : > { %1986 = vst [vmem:[%s3377_s11 + $0x258] sm:$0xff] %v1653_v31 }
 0x542   : > { %v1656_v36 = vpop.f32.mrb[44].mxu1 }
 0x543   : > { %v1657_v37 = vadd.f32 %v1656_v36, %v3445_v5  ;;  %v1658_v39 = vpop.f32.mrb[45].mxu1 }
 0x544   : > { %v1659_v40 = vadd.f32 %v1658_v39, %v3445_v5  ;;  %v1660_v41 = vpop.f32.mrb[46].mxu1 }
 0x545   : > { %1993 = vst [vmem:[%s3377_s11 + $0x290] sm:$0xff] %v1657_v37  ;;  %v1661_v42 = vadd.f32 %v1660_v41, %v3447_v7  ;;  %v1662_v43 = vpop.f32.mrb[47].mxu1 }
 0x546   : > { %1994 = vst [vmem:[%s3377_s11 + $0x298] sm:$0xff] %v1659_v40  ;;  %v1663_v44 = vadd.f32 %v1662_v43, %v3447_v7 }
 0x547   : > { %2001 = vst [vmem:[%s3377_s11 + $0x2d0] sm:$0xff] %v1661_v42 }
 0x548   : > { %2002 = vst [vmem:[%s3377_s11 + $0x2d8] sm:$0xff] %v1663_v44 }
 0x54a   : > { %v1666_v45 = vpop.f32.mrb[48].mxu1 }
 0x54b   : > { %v1667_v46 = vadd.f32 %v1666_v45, %v3465_v32  ;;  %v1668_v47 = vpop.f32.mrb[49].mxu1 }
 0x54c   : > { %v1669_v24 = vadd.f32 %v1668_v47, %v3465_v32  ;;  %v1670_v25 = vpop.f32.mrb[50].mxu1 }
 0x54d   : > { %2009 = vst [vmem:[%s3377_s11 + $0x310] sm:$0xff] %v1667_v46  ;;  %v1671_v49 = vadd.f32 %v1670_v25, %v3467_v35  ;;  %v1672_v50 = vpop.f32.mrb[51].mxu1 }
 0x54e   : > { %2010 = vst [vmem:[%s3377_s11 + $0x318] sm:$0xff] %v1669_v24  ;;  %v1673_v51 = vadd.f32 %v1672_v50, %v3467_v35 }
 0x54f   : > { %2017 = vst [vmem:[%s3377_s11 + $0x350] sm:$0xff] %v1671_v49 }
 0x550   : > { %2018 = vst [vmem:[%s3377_s11 + $0x358] sm:$0xff] %v1673_v51 }
 0x552   : > { %v1676_v53 = vpop.f32.mrb[52].mxu1 }
 0x553   : > { %v1677_v6 = vadd.f32 %v1676_v53, %v3485_v28  ;;  %v1678_v18 = vpop.f32.mrb[53].mxu1 }
 0x554   : > { %v1679_v54 = vadd.f32 %v1678_v18, %v3485_v28  ;;  %v1680_v1 = vpop.f32.mrb[54].mxu1 }
 0x555   : > { %2025 = vst [vmem:[%s3377_s11 + $0x390] sm:$0xff] %v1677_v6  ;;  %v1681_v2 = vadd.f32 %v1680_v1, %v3487_v33  ;;  %v1682_v14 = vpop.f32.mrb[55].mxu1 }
 0x556   : > { %2026 = vst [vmem:[%s3377_s11 + $0x398] sm:$0xff] %v1679_v54  ;;  %v1683_v55 = vadd.f32 %v1682_v14, %v3487_v33 }
 0x557   : > { %2033 = vst [vmem:[%s3377_s11 + $0x3d0] sm:$0xff] %v1681_v2 }
 0x558   : > { %2034 = vst [vmem:[%s3377_s11 + $0x3d8] sm:$0xff] %v1683_v55 }
 0x55a   : > { %v1832_v56 = vpop.f32.mrb[56].mxu1 }
 0x55b   : > { %v1833_v57 = vadd.f32 %v1832_v56, %v3371_v62  ;;  %v1834_v0 = vpop.f32.mrb[57].mxu1 }
 0x55c   : > { %v1835_v9 = vadd.f32 %v1834_v0, %v3371_v62  ;;  %v1836_v58 = vpop.f32.mrb[58].mxu1 }
 0x55d   : > { %1917 = vst [vmem:[%s3377_s11 + $0x30] sm:$0xff] %v1833_v57  ;;  %v1837_v59 = vadd.f32 %v1836_v58, %v3366_v60  ;;  %v1838_v3 = vpop.f32.mrb[59].mxu1 }
 0x55e   : > { %1918 = vst [vmem:[%s3377_s11 + $0x38] sm:$0xff] %v1835_v9  ;;  %v1839_v4 = vadd.f32 %v1838_v3, %v3366_v60 }
 0x55f   : > { %1925 = vst [vmem:[%s3377_s11 + $0x70] sm:$0xff] %v1837_v59 }
 0x560   : > { %1926 = vst [vmem:[%s3377_s11 + $0x78] sm:$0xff] %v1839_v4 }
 0x562   : > { %v1842_v8 = vpop.f32.mrb[60].mxu1 }
 0x563   : > { %v1843_v16 = vadd.f32 %v1842_v8, %v3368_v61  ;;  %v1844_v10 = vpop.f32.mrb[61].mxu1 }
 0x564   : > { %v1845_v62 = vadd.f32 %v1844_v10, %v3368_v61  ;;  %v1846_v34 = vpop.f32.mrb[62].mxu1 }
 0x565   : > { %1933 = vst [vmem:[%s3377_s11 + $0xb0] sm:$0xff] %v1843_v16  ;;  %v1847_v12 = vadd.f32 %v1846_v34, %v3373_v63  ;;  %v1848_v13 = vpop.f32.mrb[63].mxu1 }
 0x566   : > { %1934 = vst [vmem:[%s3377_s11 + $0xb8] sm:$0xff] %v1845_v62  ;;  %v1849_v60 = vadd.f32 %v1848_v13, %v3373_v63 }
 0x567   : > { %1941 = vst [vmem:[%s3377_s11 + $0xf0] sm:$0xff] %v1847_v12 }
 0x568   : > { %1942 = vst [vmem:[%s3377_s11 + $0xf8] sm:$0xff] %v1849_v60 }
 0x56a   : > { %v1852_v17 = vpop.f32.mrb[64].mxu1 }
 0x56b   : > { %v1853_v19 = vadd.f32 %v1852_v17, %v3384_v11  ;;  %v1854_v20 = vpop.f32.mrb[65].mxu1 }
 0x56c   : > { %v1855_v61 = vadd.f32 %v1854_v20, %v3384_v11  ;;  %v1856_v48 = vpop.f32.mrb[66].mxu1 }
 0x56d   : > { %1949 = vst [vmem:[%s3377_s11 + $0x130] sm:$0xff] %v1853_v19  ;;  %v1857_v21 = vadd.f32 %v1856_v48, %v3391_v22  ;;  %v1858_v26 = vpop.f32.mrb[67].mxu1 }
 0x56e   : > { %1950 = vst [vmem:[%s3377_s11 + $0x138] sm:$0xff] %v1855_v61  ;;  %v1859_v63 = vadd.f32 %v1858_v26, %v3391_v22 }
 0x56f   : > { %1957 = vst [vmem:[%s3377_s11 + $0x170] sm:$0xff] %v1857_v21 }
 0x570   : > { %1958 = vst [vmem:[%s3377_s11 + $0x178] sm:$0xff] %v1859_v63 }
 0x572   : > { %v1862_v27 = vpop.f32.mrb[68].mxu1 }
 0x573   : > { %v1863_v23 = vadd.f32 %v1862_v27, %v3398_v30  ;;  %v1864_v29 = vpop.f32.mrb[69].mxu1 }
 0x574   : > { %v1865_v11 = vadd.f32 %v1864_v29, %v3398_v30  ;;  %v1866_v31 = vpop.f32.mrb[70].mxu1 }
 0x575   : > { %1965 = vst [vmem:[%s3377_s11 + $0x1b0] sm:$0xff] %v1863_v23  ;;  %v1867_v36 = vadd.f32 %v1866_v31, %v3407_v38  ;;  %v1868_v37 = vpop.f32.mrb[71].mxu1 }
 0x576   : > { %1966 = vst [vmem:[%s3377_s11 + $0x1b8] sm:$0xff] %v1865_v11  ;;  %v1869_v22 = vadd.f32 %v1868_v37, %v3407_v38 }
 0x577   : > { %1973 = vst [vmem:[%s3377_s11 + $0x1f0] sm:$0xff] %v1867_v36 }
 0x578   : > { %1974 = vst [vmem:[%s3377_s11 + $0x1f8] sm:$0xff] %v1869_v22 }
 0x57a   : > { %v1872_v39 = vpop.f32.mrb[72].mxu1 }
 0x57b   : > { %v1873_v40 = vadd.f32 %v1872_v39, %v3425_v52  ;;  %v1874_v41 = vpop.f32.mrb[73].mxu1 }
 0x57c   : > { %v1875_v30 = vadd.f32 %v1874_v41, %v3425_v52  ;;  %v1876_v42 = vpop.f32.mrb[74].mxu1 }
 0x57d   : > { %1981 = vst [vmem:[%s3377_s11 + $0x230] sm:$0xff] %v1873_v40  ;;  %v1877_v43 = vadd.f32 %v1876_v42, %v3427_v15  ;;  %v1878_v44 = vpop.f32.mrb[75].mxu1 }
 0x57e   : > { %1982 = vst [vmem:[%s3377_s11 + $0x238] sm:$0xff] %v1875_v30  ;;  %v1879_v38 = vadd.f32 %v1878_v44, %v3427_v15 }
 0x57f   : > { %1989 = vst [vmem:[%s3377_s11 + $0x270] sm:$0xff] %v1877_v43 }
 0x580   : > { %1990 = vst [vmem:[%s3377_s11 + $0x278] sm:$0xff] %v1879_v38 }
 0x582   : > { %v1882_v45 = vpop.f32.mrb[76].mxu1 }
 0x583   : > { %v1883_v46 = vadd.f32 %v1882_v45, %v3445_v5  ;;  %v1884_v47 = vpop.f32.mrb[77].mxu1 }
 0x584   : > { %v1885_v52 = vadd.f32 %v1884_v47, %v3445_v5  ;;  %v1886_v24 = vpop.f32.mrb[78].mxu1 }
 0x585   : > { %1997 = vst [vmem:[%s3377_s11 + $0x2b0] sm:$0xff] %v1883_v46  ;;  %v1887_v25 = vadd.f32 %v1886_v24, %v3447_v7  ;;  %v1888_v49 = vpop.f32.mrb[79].mxu1 }
 0x586   : > { %1998 = vst [vmem:[%s3377_s11 + $0x2b8] sm:$0xff] %v1885_v52  ;;  %v1889_v15 = vadd.f32 %v1888_v49, %v3447_v7 }
 0x587   : > { %2005 = vst [vmem:[%s3377_s11 + $0x2f0] sm:$0xff] %v1887_v25 }
 0x588   : > { %2006 = vst [vmem:[%s3377_s11 + $0x2f8] sm:$0xff] %v1889_v15 }
 0x58a   : > { %v1892_v50 = vpop.f32.mrb[80].mxu1 }
 0x58b   : > { %v1893_v51 = vadd.f32 %v1892_v50, %v3465_v32  ;;  %v1894_v53 = vpop.f32.mrb[81].mxu1 }
 0x58c   : > { %v1895_v5 = vadd.f32 %v1894_v53, %v3465_v32  ;;  %v1896_v6 = vpop.f32.mrb[82].mxu1 }
 0x58d   : > { %2013 = vst [vmem:[%s3377_s11 + $0x330] sm:$0xff] %v1893_v51  ;;  %v1897_v18 = vadd.f32 %v1896_v6, %v3467_v35  ;;  %v1898_v54 = vpop.f32.mrb[83].mxu1 }
 0x58e   : > { %2014 = vst [vmem:[%s3377_s11 + $0x338] sm:$0xff] %v1895_v5  ;;  %v1899_v7 = vadd.f32 %v1898_v54, %v3467_v35 }
 0x58f   : > { %2021 = vst [vmem:[%s3377_s11 + $0x370] sm:$0xff] %v1897_v18 }
 0x590   : > { %2022 = vst [vmem:[%s3377_s11 + $0x378] sm:$0xff] %v1899_v7 }
 0x592   : > { %v1902_v1 = vpop.f32.mrb[84].mxu1 }
 0x593   : > { %v1903_v32 = vadd.f32 %v1902_v1, %v3485_v28  ;;  %v1904_v2 = vpop.f32.mrb[85].mxu1 }
 0x594   : > { %v1905_v14 = vadd.f32 %v1904_v2, %v3485_v28  ;;  %v1906_v55 = vpop.f32.mrb[86].mxu1 }
 0x595   : > { %2029 = vst [vmem:[%s3377_s11 + $0x3b0] sm:$0xff] %v1903_v32  ;;  %v1907_v56 = vadd.f32 %v1906_v55, %v3487_v33  ;;  %v1908_v57 = vpop.f32.mrb[87].mxu1 }
 0x596   : > { %2030 = vst [vmem:[%s3377_s11 + $0x3b8] sm:$0xff] %v1905_v14  ;;  %v1909_v35 = vadd.f32 %v1908_v57, %v3487_v33 }
 0x597   : > { %2037 = vst [vmem:[%s3377_s11 + $0x3f0] sm:$0xff] %v1907_v56 }
 0x598   : > { %2038 = vst [vmem:[%s3377_s11 + $0x3f8] sm:$0xff] %v1909_v35 }
 0x599   : > { %2641 = shalt.err (!%p2638_p7)
}
 0x59a   : > { %s2642_s18 = scalar_lea.hbm %s3658_s14, 16384  ;;  %s2646_s17 = scalar_lea.hbm %s3716_s8, 32768 }
 0x59b   : > { %p2643_p9 = scmp.ne.s32.totalorder %s3658_s14, %s2642_s18  ;;  %p2647_p11 = scmp.lt.u32.totalorder %s3658_s14, %s3716_s8 }
 0x59c   : > { %p2648_p2 = scmp.lt.u32.totalorder %s2646_s17, %s2642_s18  ;;  %p2650_p1 = scmp.lt.u32.totalorder %s2642_s18, %s3658_s14 }
 0x59d   : > { %p2644_p0 = pnand %p2643_p9, %p3749_p13 }
 0x59e   : > { %p2649_p12 = por %p2648_p2, %p2647_p11 }
 0x59f   : > { %p2645_p8 = pneg %p2644_p0 }
 0x5a0   : > { %p2651_p6 = por %p2650_p1, %p2649_p12 }
 0x5a2   : > { %p2652_p10 = pnand %p2651_p6, %p2645_p8 }
 0x5a4   : > { %2655 = shalt.err (!%p2652_p10)
}
 0x5a5   : > { %s2718_s13 = smov 1024   ;;  %s2719_s21 = smov 64  }
 0x5a6   : > { %2325 = dma.vmem_to_hbm [thread:$0]  (%p3749_p13), %s3660_s24, 16384, %s3658_s14, %s2040_s9, %s2718_s13, %s2718_s13, %s2719_s21  }
 0x5a7 PF: > { %s2068_s11 = sand.u32 1, %s2694_s27   ;;  %p3750_p4 = scmp.ne.s32.totalorder %s3730_s12, 0 }
 0x5a8   : > { %p3751_p5 = scmp.ge.s32.totalorder %s2706_s30, 2  ;;  %s2069_s25 = scalar_lea.sflag [#allocation4], %s2068_s11 }
 0x5aa   : > { %p2342_p3 = pnand %p3751_p5, %p3750_p4 }
 0x5ac   : > { %2689 = dma.done.wait (!%p2342_p3), %s2069_s25, 16384  }
 0x5ad   : > { %2691 = vsyncadd (!%p2342_p3), %s2069_s25, 4294950912  ;;  %s3752_s30 = sld [smem:[#allocation17_spill]]  ;;  %s3753_s20 = sld [smem:[#allocation16_spill]] }
 0x5ae   : > { %s3754_s29 = sld [smem:[#allocation18_spill]]  ;;  %s3755_s27 = smov %s2698_s28 }
 0x5b3   : > { %p25_p7 = scmp.ge.s32.totalorder %s3752_s30, 4   ;;  %s3756_s28 = smov %s3753_s20 }
 0x5b5   :  { %27 = sbr.rel (!%p25_p7) target bundleno = 12 (0xc), region = 118 }
 0x5bc   :  { %2074 = vsyncpa [#allocation3], 1 }
 0x5bd   :  { %2076 = vsyncpa [#allocation3 + $0x1], 1 }
 0x5be   :  { %2077 = vsyncpa [#allocation6], 1 }
 0x5bf   :  { %2079 = vsyncpa [#allocation6 + $0x1], 1 }
 0x5c0   :  { %2080 = vsyncpa [#allocation9], 1 }
 0x5c1   :  { %2081 = vsyncpa [#allocation4], 1 }
 0x5c2   :  { %2083 = vsyncpa [#allocation4 + $0x1], 1 }

</bundles_post_ra>
